<compile_context>
chip_gen: v7x
topology: tpu7x:2x2x1
jax: 0.10.0
libtpu: 0.0.40
codegen_flags: <defaults>
</compile_context>

<pallas_src>
import functools
import math

import jax
import jax.numpy as jnp
from jax import lax
from jax.experimental import pallas as pl
from jax.experimental.pallas import tpu as pltpu

_VMEM_LIMIT = 48 * 1024 * 1024          # > default scoped limit, < v7x physical
_LOG_LO = math.log(1e-4)                # reference clamps p to [1e-4, 1 - 1e-4]
_LOG_HI = math.log(1.0 - 1e-4)


# --------------------------------------------------------------------------
# Synthetic detector head: 1x1-conv backbone + cls/reg head, weights
# stationary, pixel axis on lanes.  Output rows are ordered
# class-major / anchor-template-minor (row = c*K + k) so a contiguous reshape
# gives the (NC, A) layout with A = k*P + p.
# --------------------------------------------------------------------------
def _head_kernel(x_ref, w1_ref, b1_ref, wc_ref, bc_ref, wr_ref, br_ref,
                 cls_ref, reg_ref):
    x = x_ref[0].astype(jnp.bfloat16)                                  # [C, tP]
    feat = jnp.dot(w1_ref[...], x, preferred_element_type=jnp.float32)  # [F, tP]
    feat = jnp.maximum(feat + b1_ref[...], 0.0)
    featb = feat.astype(jnp.bfloat16)
    cls_ref[0] = (jnp.dot(wc_ref[...], featb,
                          preferred_element_type=jnp.float32) + bc_ref[...])
    reg_ref[0] = (jnp.dot(wr_ref[...], featb,
                          preferred_element_type=jnp.float32) + br_ref[...])


def run_heads(x, params, *, pixel_tile=2048):
    """x: (B, C, P) NCHW-flattened images (pixels on lanes).
    Returns cls (B, NC*K, P) and reg (B, 4*K, P), f32."""
    B, C, P = x.shape
    # bf16 weights feed the MXU at native rate; accumulation stays f32.
    # (Feeding bf16 activations from upstream would also halve x's HBM read.)
    w1 = params["w1"].astype(jnp.bfloat16)
    wc = params["wc"].astype(jnp.bfloat16)
    wr = params["wr"].astype(jnp.bfloat16)
    b1, bc, br = params["b1"], params["bc"], params["br"]
    F = w1.shape[0]
    NCK = wc.shape[0]
    RK = wr.shape[0]

    # Pixel tile: largest multiple of 128 (<= pixel_tile) dividing P; fall
    # back to the full dim (always legal) if P is not 128-aligned.
    if P % 128 == 0:
        tP = max(128, min((pixel_tile // 128) * 128, P))
        while P % tP != 0:
            tP -= 128
    else:
        tP = P
    grid = (B, P // tP)

    const = lambda b, p: (0, 0)
    cls_hd, reg_hd = pl.pallas_call(
        _head_kernel,
        out_shape=(jax.ShapeDtypeStruct((B, NCK, P), jnp.float32),
                   jax.ShapeDtypeStruct((B, RK, P), jnp.float32)),
        grid_spec=pltpu.PrefetchScalarGridSpec(
            num_scalar_prefetch=0,
            grid=grid,
            in_specs=[
                pl.BlockSpec((1, C, tP), lambda b, p: (b, 0, p)),
                pl.BlockSpec((F, C), const),
                pl.BlockSpec((F, 1), const),
                pl.BlockSpec((NCK, F), const),
                pl.BlockSpec((NCK, 1), const),
                pl.BlockSpec((RK, F), const),
                pl.BlockSpec((RK, 1), const),
            ],
            out_specs=[
                pl.BlockSpec((1, NCK, tP), lambda b, p: (b, 0, p)),
                pl.BlockSpec((1, RK, tP), lambda b, p: (b, 0, p)),
            ],
        ),
        compiler_params=pltpu.CompilerParams(
            dimension_semantics=("parallel", "parallel"),
            vmem_limit_bytes=_VMEM_LIMIT),
    )(x, w1, b1, wc, bc, wr, br)
    return cls_hd, reg_hd


# --------------------------------------------------------------------------
# FocalLoss kernel.  grid = (B, A // tile_A): batch parallel, anchor-tile
# axis is an accumulated reduction.  All anchor-indexed tensors keep A on
# the lane axis; per-image losses are finalized on the last anchor tile.
# --------------------------------------------------------------------------
def _focal_loss_kernel(cls_ref, reg_ref, anc_ref, ann_r_ref, ann_c_ref,
                       out_ref, cls_acc, reg_acc, np_acc, *, alpha):
    a_step = pl.program_id(1)
    n_a = pl.num_programs(1)

    @pl.when(a_step == 0)
    def _():
        cls_acc[...] = jnp.zeros_like(cls_acc)
        reg_acc[...] = jnp.zeros_like(reg_acc)
        np_acc[...] = jnp.zeros_like(np_acc)

    logits = cls_ref[0]            # [NC, tA]  pre-sigmoid class scores
    regression = reg_ref[0]        # [4, tA]   rows = (dy, dx, dh, dw)
    anc = anc_ref[...]             # [8, tA]   rows = (y1,x1,y2,x2,cy,cx,h,w)
    ann = ann_r_ref[0]             # [M, 8]    cols = (x1,y1,x2,y2,cls,0,0,0)
    annT = ann_c_ref[0]            # [8, M]    same data, annotation on lanes

    NC, tA = logits.shape
    M = ann.shape[0]

    a_y1, a_x1, a_y2, a_x2 = anc[0:1], anc[1:2], anc[2:3], anc[3:4]
    acy, acx, ah, aw = anc[4:5], anc[5:6], anc[6:7], anc[7:8]

    b_x1 = ann[:, 0:1]                                       # [M, 1]
    b_y1 = ann[:, 1:2]
    b_x2 = ann[:, 2:3]
    b_y2 = ann[:, 3:4]
    b_cls = ann[:, 4:5]
    valid = b_cls >= 0.0                                     # pad rows = -1

    # ---- IoU assignment (annotations x anchors, [M, tA], lane-dense) -----
    iw = jnp.maximum(jnp.minimum(a_x2, b_x2) - jnp.maximum(a_x1, b_x1), 0.0)
    ih = jnp.maximum(jnp.minimum(a_y2, b_y2) - jnp.maximum(a_y1, b_y1), 0.0)
    inter = iw * ih                                          # [M, tA]
    area_a = aw * ah                                         # [1, tA]
    area_b = (b_x2 - b_x1) * (b_y2 - b_y1)                   # [M, 1]
    ua = jnp.maximum(area_a + area_b - inter, 1e-8)
    iou = jnp.where(valid, inter / ua, -1.0)                 # exact division

    iou_max = jnp.max(iou, axis=0, keepdims=True)            # [1, tA]
    m_idx = lax.broadcasted_iota(jnp.int32, (M, tA), 0)
    # TODO(synk): min-index tie-break; torch.max ties may differ bit-exactly.
    argmax = jnp.min(jnp.where(iou == iou_max, m_idx, M), axis=0,
                     keepdims=True)
    assign = (m_idx == argmax).astype(jnp.float32)           # [M, tA] one-hot

    # Gather the assigned annotation fields with one tiny MXU matmul instead
    # of 5 cross-sublane VPU/XLU reductions: [8, M] x [M, tA] -> [8, tA].
    gath = jnp.dot(annT, assign, preferred_element_type=jnp.float32)
    as_x1, as_y1 = gath[0:1], gath[1:2]
    as_x2, as_y2 = gath[2:3], gath[3:4]
    as_cls = gath[4:5]

    pos = iou_max >= 0.5                                     # [1, tA]
    neg = iou_max < 0.4
    pos_f = pos.astype(jnp.float32)
    np_tile = jnp.sum(pos_f)

    # ---- focal classification loss ([NC, tA]) -----------------------------
    # Stable log-sigmoid (one exp + one log + one approx reciprocal), with
    # the reference's clamp of p to [1e-4, 1-1e-4] folded in via clipping.
    x = logits
    e = jnp.exp(-jnp.abs(x))
    s = jnp.log(1.0 + e)
    log_p = jnp.clip(jnp.minimum(x, 0.0) - s, _LOG_LO, _LOG_HI)
    log_1mp = jnp.clip(jnp.minimum(-x, 0.0) - s, _LOG_LO, _LOG_HI)
    inv = pl.reciprocal(1.0 + e, approx=True)
    p = jnp.clip(jnp.where(x >= 0.0, inv, e * inv), 1e-4, 1.0 - 1e-4)

    nc_iota = lax.broadcasted_iota(jnp.int32, (NC, tA), 0)
    is_one = jnp.logical_and(pos, nc_iota == as_cls.astype(jnp.int32))
    not_ign = jnp.logical_or(pos, neg)                       # [1, tA]

    alpha_f = jnp.where(is_one, alpha, 1.0 - alpha)
    fw = jnp.where(is_one, 1.0 - p, p)
    bce = jnp.where(is_one, -log_p, -log_1mp)                # targets in {0,1}
    cls_tile = jnp.sum(jnp.where(not_ign, alpha_f * (fw * fw) * bce, 0.0))

    # ---- smooth-L1 regression over positive anchors ([1, tA] rows) --------
    gw_raw = as_x2 - as_x1
    gh_raw = as_y2 - as_y1
    gcx = as_x1 + 0.5 * gw_raw
    gcy = as_y1 + 0.5 * gh_raw
    gw = jnp.maximum(gw_raw, 1.0)
    gh = jnp.maximum(gh_raw, 1.0)
    tdx = (gcx - acx) / aw
    tdy = (gcy - acy) / ah
    tdw = jnp.log(gw / aw)
    tdh = jnp.log(gh / ah)
    # TODO(synk): some FocalLoss variants normalize targets by [.1,.1,.2,.2];
    # the EfficientDet-style reference does not, so it is omitted here.

    def smooth_l1(t, r):
        d = jnp.abs(t - r)
        return jnp.where(d <= 1.0 / 9.0, 0.5 * 9.0 * d * d, d - 0.5 / 9.0)

    sl1 = (smooth_l1(tdy, regression[0:1]) + smooth_l1(tdx, regression[1:2])
           + smooth_l1(tdh, regression[2:3]) + smooth_l1(tdw, regression[3:4]))
    reg_tile = jnp.sum(sl1 * pos_f)

    cls_acc[...] += cls_tile
    reg_acc[...] += reg_tile
    np_acc[...] += np_tile

    @pl.when(a_step == n_a - 1)
    def _():
        npos = np_acc[0, 0]
        cls_b = cls_acc[0, 0] / jnp.maximum(npos, 1.0)
        reg_b = jnp.where(npos > 0.0,
                          reg_acc[0, 0] / jnp.maximum(npos * 4.0, 1.0), 0.0)
        # All-invalid-annotations images fall out of the general path (all
        # anchors negative, num_pos=0), matching the PyTorch special case.
        ones = jnp.ones((1, 1, 1), jnp.float32)
        out_ref[...] = jnp.concatenate([cls_b * ones, reg_b * ones], axis=2)


def focal_loss(classification, regression, anchor_table, annotations,
               *, alpha=0.25, tile_a=None):
    """classification (B,NC,A), regression (B,4,A), anchor_table (8,A),
    annotations (B,M,5) -> (cls_loss (1,), reg_loss (1,))."""
    B, NC, A = classification.shape
    M = annotations.shape[1]

    # Tiny annotation tables in both layouts: rows for IoU broadcasting,
    # transposed for the MXU gather.
    ann_rows = (jnp.zeros((B, M, 8), jnp.float32)
                .at[:, :, :5].set(annotations.astype(jnp.float32)))
    ann_cols = jnp.transpose(ann_rows, (0, 2, 1))            # (B, 8, M)

    # Anchor-axis tile: multiple of 128 dividing A (~2048 for prod shapes).
    if A % 128 != 0:
        tile_a = A
    else:
        tile_a = 2048 if tile_a is None else tile_a
        tile_a = max(128, min((tile_a // 128) * 128, A))
        while A % tile_a != 0:
            tile_a -= 128
    n_a = A // tile_a

    kern = functools.partial(_focal_loss_kernel, alpha=alpha)
    out = pl.pallas_call(
        kern,
        out_shape=jax.ShapeDtypeStruct((B, 1, 2), jnp.float32),
        grid_spec=pltpu.PrefetchScalarGridSpec(
            num_scalar_prefetch=0,
            grid=(B, n_a),
            in_specs=[
                pl.BlockSpec((1, NC, tile_a), lambda b, a: (b, 0, a)),
                pl.BlockSpec((1, 4, tile_a), lambda b, a: (b, 0, a)),
                pl.BlockSpec((8, tile_a), lambda b, a: (0, a)),
                pl.BlockSpec((1, M, 8), lambda b, a: (b, 0, 0)),
                pl.BlockSpec((1, 8, M), lambda b, a: (b, 0, 0)),
            ],
            out_specs=pl.BlockSpec((1, 1, 2), lambda b, a: (b, 0, 0)),
            scratch_shapes=[
                pltpu.VMEM((1, 1), jnp.float32),   # cls loss sum
                pltpu.VMEM((1, 1), jnp.float32),   # reg loss sum
                pltpu.VMEM((1, 1), jnp.float32),   # num positive anchors
            ],
        ),
        compiler_params=pltpu.CompilerParams(
            dimension_semantics=("parallel", "arbitrary"),
            vmem_limit_bytes=_VMEM_LIMIT),
    )(classification, regression, anchor_table, ann_rows, ann_cols)

    cls_loss = jnp.mean(out[:, 0, 0], keepdims=True)
    reg_loss = jnp.mean(out[:, 0, 1], keepdims=True)
    return cls_loss, reg_loss


# --------------------------------------------------------------------------
# Glue: parameters, anchors, and the ModelWithLoss forward.
# --------------------------------------------------------------------------
def init_params(key, C, F, K, NC):
    """Head weights.  Output rows are class/coord-major, anchor-template-minor
    (row = c*K + k for cls, d*K + k for reg).  F=128 would give a full-width
    MXU contraction; F=32 is kept for the toy run."""
    k1, k2, k3 = jax.random.split(key, 3)
    return dict(
        w1=jax.random.normal(k1, (F, C), jnp.float32) * 0.1,
        b1=jnp.zeros((F, 1), jnp.float32),
        wc=jax.random.normal(k2, (NC * K, F), jnp.float32) * 0.1,
        bc=jnp.full((NC * K, 1), -2.0, jnp.float32),
        wr=jax.random.normal(k3, (4 * K, F), jnp.float32) * 0.1,
        br=jnp.zeros((4 * K, 1), jnp.float32),
    )


def make_anchors(H, W, sizes):
    """Anchor corners (A, 4) = (y1, x1, y2, x2), K-major: a = k*H*W + y*W + x."""
    ys = jnp.arange(H, dtype=jnp.float32) + 0.5
    xs = jnp.arange(W, dtype=jnp.float32) + 0.5
    cy, cx = jnp.meshgrid(ys, xs, indexing="ij")             # [H, W]
    per_size = []
    for s in sizes:
        h = s / 2.0
        per_size.append(jnp.stack([cy - h, cx - h, cy + h, cx + h], axis=-1))
    anc = jnp.stack(per_size, axis=0)                        # [K, H, W, 4]
    return anc.reshape(len(sizes) * H * W, 4)


def make_anchor_table(anchors):
    """(A, 4) corners -> (8, A) lane-dense table [y1,x1,y2,x2,cy,cx,h,w]."""
    y1, x1, y2, x2 = anchors[:, 0], anchors[:, 1], anchors[:, 2], anchors[:, 3]
    h = y2 - y1
    w = x2 - x1
    cy = y1 + 0.5 * h
    cx = x1 + 0.5 * w
    return jnp.stack([y1, x1, y2, x2, cy, cx, h, w], axis=0)


def model_with_loss(imgs, annotations, params, anchors, *, K, NC, tile_a=None):
    """Equivalent of ModelWithLoss.forward(imgs, annotations) -> (cls, reg)."""
    B, C, H, W = imgs.shape
    P = H * W
    # NCHW already has pixels contiguous on the last axis -> free reshape,
    # no transpose / pad HBM round-trips.
    x = imgs.reshape(B, C, P)
    cls_hd, reg_hd = run_heads(x, params)
    A = K * P
    # Contiguous reshapes: row c*K+k, pixel p  ->  (c, a) with a = k*P + p.
    classification = cls_hd.reshape(B, NC, A)
    regression = reg_hd.reshape(B, 4, A)
    anchor_table = make_anchor_table(anchors)                # (8, A)
    # TODO(synk): the `debug=True` branch (drawing boxes / obj_list) has no
    # kernel equivalent and is omitted.
    return focal_loss(classification, regression, anchor_table, annotations,
                      tile_a=tile_a)


if __name__ == "__main__":
    B, C, H, W = 2, 4, 16, 16
    F, K, NC, M = 32, 2, 8, 8

    key = jax.random.PRNGKey(0)
    k_img, k_param = jax.random.split(key)
    imgs = jax.random.normal(k_img, (B, C, H, W), jnp.float32)
    params = init_params(k_param, C, F, K, NC)
    anchors = make_anchors(H, W, sizes=(4.0, 6.0))           # A = 512

    # annotations: (x1, y1, x2, y2, class), padded with -1 (deterministic).
    annotations = -jnp.ones((B, M, 5), jnp.float32)
    annotations = annotations.at[0, 0].set(
        jnp.array([2.0, 3.0, 7.0, 9.0, 1.0], jnp.float32))
    annotations = annotations.at[0, 1].set(
        jnp.array([8.0, 8.0, 14.0, 15.0, 4.0], jnp.float32))
    annotations = annotations.at[1, 0].set(
        jnp.array([1.0, 1.0, 6.0, 6.0, 2.0], jnp.float32))

    # tile_a=256 exercises the anchor-tiled accumulator path (A=512 -> 2 tiles).
    fwd = jax.jit(functools.partial(model_with_loss, K=K, NC=NC, tile_a=256))
    cls_loss, reg_loss = fwd(imgs, annotations, params, anchors)
    jax.block_until_ready((cls_loss, reg_loss))

    assert cls_loss.shape == (1,) and reg_loss.shape == (1,)
    assert bool(jnp.isfinite(cls_loss).all())
    assert bool(jnp.isfinite(reg_loss).all())
    print("KERNEL_OK")
</pallas_src>

<mosaic_0001>
module attributes {stable_mosaic.version = 11 : i64} {
  func.func @_head_kernel(%arg0: i32, %arg1: i32, %arg2: memref<1x4x256xf32, #tpu.memory_space<vmem>>, %arg3: memref<32x4xbf16, #tpu.memory_space<vmem>>, %arg4: memref<32x1xf32, #tpu.memory_space<vmem>>, %arg5: memref<16x32xbf16, #tpu.memory_space<vmem>>, %arg6: memref<16x1xf32, #tpu.memory_space<vmem>>, %arg7: memref<8x32xbf16, #tpu.memory_space<vmem>>, %arg8: memref<8x1xf32, #tpu.memory_space<vmem>>, %arg9: memref<1x16x256xf32, #tpu.memory_space<vmem>>, %arg10: memref<1x8x256xf32, #tpu.memory_space<vmem>>) attributes {dimension_semantics = [#tpu.dimension_semantics<parallel>, #tpu.dimension_semantics<parallel>], iteration_bounds = array<i64: 2, 1>, scalar_prefetch = 0 : i64, scratch_operands = 0 : i64, tpu.core_type = #tpu.core_type<tc>, window_params = [{transform_indices = @transform_0, window_bounds = array<i64: 1, 4, 256>}, {pipeline_mode = #tpu.pipeline_mode<synchronous>, transform_indices = @transform_1, window_bounds = array<i64: 32, 4>}, {pipeline_mode = #tpu.pipeline_mode<synchronous>, transform_indices = @transform_2, window_bounds = array<i64: 32, 1>}, {pipeline_mode = #tpu.pipeline_mode<synchronous>, transform_indices = @transform_3, window_bounds = array<i64: 16, 32>}, {pipeline_mode = #tpu.pipeline_mode<synchronous>, transform_indices = @transform_4, window_bounds = array<i64: 16, 1>}, {pipeline_mode = #tpu.pipeline_mode<synchronous>, transform_indices = @transform_5, window_bounds = array<i64: 8, 32>}, {pipeline_mode = #tpu.pipeline_mode<synchronous>, transform_indices = @transform_6, window_bounds = array<i64: 8, 1>}, {transform_indices = @transform_7, window_bounds = array<i64: 1, 16, 256>}, {transform_indices = @transform_8, window_bounds = array<i64: 1, 8, 256>}]} {
    %c0 = arith.constant 0 : index
    %c0_0 = arith.constant 0 : index
    %c0_1 = arith.constant 0 : index
    %0 = vector.load %arg2[%c0, %c0_0, %c0_1] : memref<1x4x256xf32, #tpu.memory_space<vmem>>, vector<1x4x256xf32>
    %1 = vector.shape_cast %0 : vector<1x4x256xf32> to vector<4x256xf32>
    %2 = arith.truncf %1 : vector<4x256xf32> to vector<4x256xbf16>
    %c0_2 = arith.constant 0 : index
    %c0_3 = arith.constant 0 : index
    %3 = vector.load %arg3[%c0_2, %c0_3] : memref<32x4xbf16, #tpu.memory_space<vmem>>, vector<32x4xbf16>
    %cst = arith.constant dense<0.000000e+00> : vector<32x256xf32>
    %4 = tpu.matmul %3, %2, %cst {dimension_numbers = #tpu.dot_dimension_numbers<[1], [0], [0], [1], [0, 0, 1, 1], [], []>} : vector<32x4xbf16>, vector<4x256xbf16>, vector<32x256xf32> -> vector<32x256xf32>
    %c0_4 = arith.constant 0 : index
    %c0_5 = arith.constant 0 : index
    %5 = vector.load %arg4[%c0_4, %c0_5] : memref<32x1xf32, #tpu.memory_space<vmem>>, vector<32x1xf32>
    %6 = vector.broadcast %5 : vector<32x1xf32> to vector<32x256xf32>
    %7 = arith.addf %4, %6 : vector<32x256xf32>
    %cst_6 = arith.constant 0.000000e+00 : f32
    %8 = vector.broadcast %cst_6 : f32 to vector<32x256xf32>
    %9 = arith.maximumf %7, %8 : vector<32x256xf32>
    %10 = arith.truncf %9 : vector<32x256xf32> to vector<32x256xbf16>
    %c0_7 = arith.constant 0 : index
    %c0_8 = arith.constant 0 : index
    %11 = vector.load %arg5[%c0_7, %c0_8] : memref<16x32xbf16, #tpu.memory_space<vmem>>, vector<16x32xbf16>
    %cst_9 = arith.constant dense<0.000000e+00> : vector<16x256xf32>
    %12 = tpu.matmul %11, %10, %cst_9 {dimension_numbers = #tpu.dot_dimension_numbers<[1], [0], [0], [1], [0, 0, 1, 1], [], []>} : vector<16x32xbf16>, vector<32x256xbf16>, vector<16x256xf32> -> vector<16x256xf32>
    %c0_10 = arith.constant 0 : index
    %c0_11 = arith.constant 0 : index
    %13 = vector.load %arg6[%c0_10, %c0_11] : memref<16x1xf32, #tpu.memory_space<vmem>>, vector<16x1xf32>
    %14 = vector.broadcast %13 : vector<16x1xf32> to vector<16x256xf32>
    %15 = arith.addf %12, %14 : vector<16x256xf32>
    %c0_12 = arith.constant 0 : index
    %c0_13 = arith.constant 0 : index
    %c0_14 = arith.constant 0 : index
    %16 = vector.load %arg9[%c0_12, %c0_13, %c0_14] : memref<1x16x256xf32, #tpu.memory_space<vmem>>, vector<1x16x256xf32>
    %17 = vector.shape_cast %16 : vector<1x16x256xf32> to vector<16x256xf32>
    %18 = vector.shape_cast %15 : vector<16x256xf32> to vector<1x16x256xf32>
    tpu.vector_store %arg9[%c0_12, %c0_13, %c0_14], %18 {strides = array<i32>} : memref<1x16x256xf32, #tpu.memory_space<vmem>>, vector<1x16x256xf32>,
    %c0_15 = arith.constant 0 : index
    %c0_16 = arith.constant 0 : index
    %19 = vector.load %arg7[%c0_15, %c0_16] : memref<8x32xbf16, #tpu.memory_space<vmem>>, vector<8x32xbf16>
    %cst_17 = arith.constant dense<0.000000e+00> : vector<8x256xf32>
    %20 = tpu.matmul %19, %10, %cst_17 {dimension_numbers = #tpu.dot_dimension_numbers<[1], [0], [0], [1], [0, 0, 1, 1], [], []>} : vector<8x32xbf16>, vector<32x256xbf16>, vector<8x256xf32> -> vector<8x256xf32>
    %c0_18 = arith.constant 0 : index
    %c0_19 = arith.constant 0 : index
    %21 = vector.load %arg8[%c0_18, %c0_19] : memref<8x1xf32, #tpu.memory_space<vmem>>, vector<8x1xf32>
    %22 = vector.broadcast %21 : vector<8x1xf32> to vector<8x256xf32>
    %23 = arith.addf %20, %22 : vector<8x256xf32>
    %c0_20 = arith.constant 0 : index
    %c0_21 = arith.constant 0 : index
    %c0_22 = arith.constant 0 : index
    %24 = vector.load %arg10[%c0_20, %c0_21, %c0_22] : memref<1x8x256xf32, #tpu.memory_space<vmem>>, vector<1x8x256xf32>
    %25 = vector.shape_cast %24 : vector<1x8x256xf32> to vector<8x256xf32>
    %26 = vector.shape_cast %23 : vector<8x256xf32> to vector<1x8x256xf32>
    tpu.vector_store %arg10[%c0_20, %c0_21, %c0_22], %26 {strides = array<i32>} : memref<1x8x256xf32, #tpu.memory_space<vmem>>, vector<1x8x256xf32>,
    return
  }
  func.func @transform_0(%arg0: i32, %arg1: i32) -> (i32, i32, i32) {
    %c0_i32 = arith.constant 0 : i32
    %c0_i32_0 = arith.constant 0 : i32
    return %arg0, %c0_i32, %arg1 : i32, i32, i32
  }
  func.func @transform_1(%arg0: i32, %arg1: i32) -> (i32, i32) {
    %c0_i32 = arith.constant 0 : i32
    %c0_i32_0 = arith.constant 0 : i32
    %c0_i32_1 = arith.constant 0 : i32
    return %c0_i32, %c0_i32_0 : i32, i32
  }
  func.func @transform_2(%arg0: i32, %arg1: i32) -> (i32, i32) {
    %c0_i32 = arith.constant 0 : i32
    %c0_i32_0 = arith.constant 0 : i32
    %c0_i32_1 = arith.constant 0 : i32
    return %c0_i32, %c0_i32_0 : i32, i32
  }
  func.func @transform_3(%arg0: i32, %arg1: i32) -> (i32, i32) {
    %c0_i32 = arith.constant 0 : i32
    %c0_i32_0 = arith.constant 0 : i32
    %c0_i32_1 = arith.constant 0 : i32
    return %c0_i32, %c0_i32_0 : i32, i32
  }
  func.func @transform_4(%arg0: i32, %arg1: i32) -> (i32, i32) {
    %c0_i32 = arith.constant 0 : i32
    %c0_i32_0 = arith.constant 0 : i32
    %c0_i32_1 = arith.constant 0 : i32
    return %c0_i32, %c0_i32_0 : i32, i32
  }
  func.func @transform_5(%arg0: i32, %arg1: i32) -> (i32, i32) {
    %c0_i32 = arith.constant 0 : i32
    %c0_i32_0 = arith.constant 0 : i32
    %c0_i32_1 = arith.constant 0 : i32
    return %c0_i32, %c0_i32_0 : i32, i32
  }
  func.func @transform_6(%arg0: i32, %arg1: i32) -> (i32, i32) {
    %c0_i32 = arith.constant 0 : i32
    %c0_i32_0 = arith.constant 0 : i32
    %c0_i32_1 = arith.constant 0 : i32
    return %c0_i32, %c0_i32_0 : i32, i32
  }
  func.func @transform_7(%arg0: i32, %arg1: i32) -> (i32, i32, i32) {
    %c0_i32 = arith.constant 0 : i32
    %c0_i32_0 = arith.constant 0 : i32
    return %arg0, %c0_i32, %arg1 : i32, i32, i32
  }
  func.func @transform_8(%arg0: i32, %arg1: i32) -> (i32, i32, i32) {
    %c0_i32 = arith.constant 0 : i32
    %c0_i32_0 = arith.constant 0 : i32
    return %arg0, %c0_i32, %arg1 : i32, i32, i32
  }
}

module attributes {stable_mosaic.version = 11 : i64} {
  func.func @_focal_loss_kernel(%arg0: i32, %arg1: i32, %arg2: memref<1x8x256xf32, #tpu.memory_space<vmem>>, %arg3: memref<1x4x256xf32, #tpu.memory_space<vmem>>, %arg4: memref<8x256xf32, #tpu.memory_space<vmem>>, %arg5: memref<1x8x8xf32, #tpu.memory_space<vmem>>, %arg6: memref<1x8x8xf32, #tpu.memory_space<vmem>>, %arg7: memref<1x1x2xf32, #tpu.memory_space<vmem>>, %arg8: memref<1x1xf32, #tpu.memory_space<vmem>>, %arg9: memref<1x1xf32, #tpu.memory_space<vmem>>, %arg10: memref<1x1xf32, #tpu.memory_space<vmem>>) attributes {dimension_semantics = [#tpu.dimension_semantics<parallel>, #tpu.dimension_semantics<arbitrary>], iteration_bounds = array<i64: 2, 2>, scalar_prefetch = 0 : i64, scratch_operands = 3 : i64, tpu.core_type = #tpu.core_type<tc>, window_params = [{transform_indices = @transform_0, window_bounds = array<i64: 1, 8, 256>}, {transform_indices = @transform_1, window_bounds = array<i64: 1, 4, 256>}, {transform_indices = @transform_2, window_bounds = array<i64: 8, 256>}, {transform_indices = @transform_3, window_bounds = array<i64: 1, 8, 8>}, {transform_indices = @transform_4, window_bounds = array<i64: 1, 8, 8>}, {transform_indices = @transform_5, window_bounds = array<i64: 1, 1, 2>}]} {
    %c0_i32 = arith.constant 0 : i32
    %0 = arith.cmpi eq, %arg1, %c0_i32 : i32
    %1 = arith.extui %0 : i1 to i32
    %c0_i32_0 = arith.constant 0 : i32
    %2 = arith.cmpi ne, %1, %c0_i32_0 : i32
    scf.if %2 {
      %cst_74 = arith.constant 0.000000e+00 : f32
      %240 = vector.broadcast %cst_74 : f32 to vector<1x1xf32>
      %c0_75 = arith.constant 0 : index
      %c0_76 = arith.constant 0 : index
      %241 = vector.load %arg8[%c0_75, %c0_76] : memref<1x1xf32, #tpu.memory_space<vmem>>, vector<1x1xf32>
      tpu.vector_store %arg8[%c0_75, %c0_76], %240 {strides = array<i32>} : memref<1x1xf32, #tpu.memory_space<vmem>>, vector<1x1xf32>,
      %cst_77 = arith.constant 0.000000e+00 : f32
      %242 = vector.broadcast %cst_77 : f32 to vector<1x1xf32>
      %c0_78 = arith.constant 0 : index
      %c0_79 = arith.constant 0 : index
      %243 = vector.load %arg9[%c0_78, %c0_79] : memref<1x1xf32, #tpu.memory_space<vmem>>, vector<1x1xf32>
      tpu.vector_store %arg9[%c0_78, %c0_79], %242 {strides = array<i32>} : memref<1x1xf32, #tpu.memory_space<vmem>>, vector<1x1xf32>,
      %cst_80 = arith.constant 0.000000e+00 : f32
      %244 = vector.broadcast %cst_80 : f32 to vector<1x1xf32>
      %c0_81 = arith.constant 0 : index
      %c0_82 = arith.constant 0 : index
      %245 = vector.load %arg10[%c0_81, %c0_82] : memref<1x1xf32, #tpu.memory_space<vmem>>, vector<1x1xf32>
      tpu.vector_store %arg10[%c0_81, %c0_82], %244 {strides = array<i32>} : memref<1x1xf32, #tpu.memory_space<vmem>>, vector<1x1xf32>,
    } else {
    }
    %c0 = arith.constant 0 : index
    %c0_1 = arith.constant 0 : index
    %c0_2 = arith.constant 0 : index
    %3 = vector.load %arg2[%c0, %c0_1, %c0_2] : memref<1x8x256xf32, #tpu.memory_space<vmem>>, vector<1x8x256xf32>
    %4 = vector.shape_cast %3 : vector<1x8x256xf32> to vector<8x256xf32>
    %c0_3 = arith.constant 0 : index
    %c0_4 = arith.constant 0 : index
    %c0_5 = arith.constant 0 : index
    %5 = vector.load %arg3[%c0_3, %c0_4, %c0_5] : memref<1x4x256xf32, #tpu.memory_space<vmem>>, vector<1x4x256xf32>
    %6 = vector.shape_cast %5 : vector<1x4x256xf32> to vector<4x256xf32>
    %c0_6 = arith.constant 0 : index
    %c0_7 = arith.constant 0 : index
    %7 = vector.load %arg4[%c0_6, %c0_7] : memref<8x256xf32, #tpu.memory_space<vmem>>, vector<8x256xf32>
    %c0_8 = arith.constant 0 : index
    %c0_9 = arith.constant 0 : index
    %c0_10 = arith.constant 0 : index
    %8 = vector.load %arg5[%c0_8, %c0_9, %c0_10] : memref<1x8x8xf32, #tpu.memory_space<vmem>>, vector<1x8x8xf32>
    %9 = vector.shape_cast %8 : vector<1x8x8xf32> to vector<8x8xf32>
    %c0_11 = arith.constant 0 : index
    %c0_12 = arith.constant 0 : index
    %c0_13 = arith.constant 0 : index
    %10 = vector.load %arg6[%c0_11, %c0_12, %c0_13] : memref<1x8x8xf32, #tpu.memory_space<vmem>>, vector<1x8x8xf32>
    %11 = vector.shape_cast %10 : vector<1x8x8xf32> to vector<8x8xf32>
    %12 = vector.extract_strided_slice %7 {offsets = [0, 0], sizes = [1, 256], strides = [1, 1]} : vector<8x256xf32> to vector<1x256xf32>
    %13 = vector.extract_strided_slice %7 {offsets = [1, 0], sizes = [1, 256], strides = [1, 1]} : vector<8x256xf32> to vector<1x256xf32>
    %14 = vector.extract_strided_slice %7 {offsets = [2, 0], sizes = [1, 256], strides = [1, 1]} : vector<8x256xf32> to vector<1x256xf32>
    %15 = vector.extract_strided_slice %7 {offsets = [3, 0], sizes = [1, 256], strides = [1, 1]} : vector<8x256xf32> to vector<1x256xf32>
    %16 = vector.extract_strided_slice %7 {offsets = [4, 0], sizes = [1, 256], strides = [1, 1]} : vector<8x256xf32> to vector<1x256xf32>
    %17 = vector.extract_strided_slice %7 {offsets = [5, 0], sizes = [1, 256], strides = [1, 1]} : vector<8x256xf32> to vector<1x256xf32>
    %18 = vector.extract_strided_slice %7 {offsets = [6, 0], sizes = [1, 256], strides = [1, 1]} : vector<8x256xf32> to vector<1x256xf32>
    %19 = vector.extract_strided_slice %7 {offsets = [7, 0], sizes = [1, 256], strides = [1, 1]} : vector<8x256xf32> to vector<1x256xf32>
    %20 = vector.extract_strided_slice %9 {offsets = [0, 0], sizes = [8, 1], strides = [1, 1]} : vector<8x8xf32> to vector<8x1xf32>
    %21 = vector.extract_strided_slice %9 {offsets = [0, 1], sizes = [8, 1], strides = [1, 1]} : vector<8x8xf32> to vector<8x1xf32>
    %22 = vector.extract_strided_slice %9 {offsets = [0, 2], sizes = [8, 1], strides = [1, 1]} : vector<8x8xf32> to vector<8x1xf32>
    %23 = vector.extract_strided_slice %9 {offsets = [0, 3], sizes = [8, 1], strides = [1, 1]} : vector<8x8xf32> to vector<8x1xf32>
    %24 = vector.extract_strided_slice %9 {offsets = [0, 4], sizes = [8, 1], strides = [1, 1]} : vector<8x8xf32> to vector<8x1xf32>
    %cst = arith.constant 0.000000e+00 : f32
    %25 = vector.broadcast %cst : f32 to vector<8x1xf32>
    %26 = arith.cmpf oge, %24, %25 : vector<8x1xf32>
    %27 = vector.broadcast %15 : vector<1x256xf32> to vector<8x256xf32>
    %28 = vector.broadcast %22 : vector<8x1xf32> to vector<8x256xf32>
    %29 = arith.minimumf %27, %28 : vector<8x256xf32>
    %30 = vector.broadcast %13 : vector<1x256xf32> to vector<8x256xf32>
    %31 = vector.broadcast %20 : vector<8x1xf32> to vector<8x256xf32>
    %32 = arith.maximumf %30, %31 : vector<8x256xf32>
    %33 = arith.subf %29, %32 : vector<8x256xf32>
    %cst_14 = arith.constant 0.000000e+00 : f32
    %34 = vector.broadcast %cst_14 : f32 to vector<8x256xf32>
    %35 = arith.maximumf %33, %34 : vector<8x256xf32>
    %36 = vector.broadcast %14 : vector<1x256xf32> to vector<8x256xf32>
    %37 = vector.broadcast %23 : vector<8x1xf32> to vector<8x256xf32>
    %38 = arith.minimumf %36, %37 : vector<8x256xf32>
    %39 = vector.broadcast %12 : vector<1x256xf32> to vector<8x256xf32>
    %40 = vector.broadcast %21 : vector<8x1xf32> to vector<8x256xf32>
    %41 = arith.maximumf %39, %40 : vector<8x256xf32>
    %42 = arith.subf %38, %41 : vector<8x256xf32>
    %cst_15 = arith.constant 0.000000e+00 : f32
    %43 = vector.broadcast %cst_15 : f32 to vector<8x256xf32>
    %44 = arith.maximumf %42, %43 : vector<8x256xf32>
    %45 = arith.mulf %35, %44 : vector<8x256xf32>
    %46 = arith.mulf %19, %18 : vector<1x256xf32>
    %47 = arith.subf %22, %20 : vector<8x1xf32>
    %48 = arith.subf %23, %21 : vector<8x1xf32>
    %49 = arith.mulf %47, %48 : vector<8x1xf32>
    %50 = vector.broadcast %46 : vector<1x256xf32> to vector<8x256xf32>
    %51 = vector.broadcast %49 : vector<8x1xf32> to vector<8x256xf32>
    %52 = arith.addf %50, %51 : vector<8x256xf32>
    %53 = arith.subf %52, %45 : vector<8x256xf32>
    %cst_16 = arith.constant 9.99999993E-9 : f32
    %54 = vector.broadcast %cst_16 : f32 to vector<8x256xf32>
    %55 = arith.maximumf %53, %54 : vector<8x256xf32>
    %56 = arith.divf %45, %55 : vector<8x256xf32>
    %cst_17 = arith.constant -1.000000e+00 : f32
    %57 = vector.shape_cast %26 : vector<8x1xi1> to vector<8x1xi1>
    %58 = vector.broadcast %57 : vector<8x1xi1> to vector<8x256xi1>
    %59 = vector.broadcast %cst_17 : f32 to vector<8x256xf32>
    %60 = arith.select %58, %56, %59 : vector<8x256xi1>, vector<8x256xf32>
    %cst_18 = arith.constant dense<0xFF800000> : vector<256xf32>
    %61 = vector.multi_reduction <maximumf>, %60, %cst_18 [0] : vector<8x256xf32> to vector<256xf32>
    %62 = vector.shape_cast %61 : vector<256xf32> to vector<1x256xf32>
    %63 = tpu.iota {dimensions = array<i32: 0>} : vector<8x256xi32>
    %64 = vector.broadcast %62 : vector<1x256xf32> to vector<8x256xf32>
    %65 = arith.cmpf oeq, %60, %64 : vector<8x256xf32>
    %c8_i32 = arith.constant 8 : i32
    %66 = vector.broadcast %c8_i32 : i32 to vector<8x256xi32>
    %67 = arith.select %65, %63, %66 : vector<8x256xi1>, vector<8x256xi32>
    %cst_19 = arith.constant dense<2147483647> : vector<256xi32>
    %68 = vector.multi_reduction <minsi>, %67, %cst_19 [0] : vector<8x256xi32> to vector<256xi32>
    %69 = vector.shape_cast %68 : vector<256xi32> to vector<1x256xi32>
    %70 = vector.broadcast %69 : vector<1x256xi32> to vector<8x256xi32>
    %71 = arith.cmpi eq, %63, %70 : vector<8x256xi32>
    %72 = arith.extui %71 : vector<8x256xi1> to vector<8x256xi32>
    %73 = arith.sitofp %72 : vector<8x256xi32> to vector<8x256xf32>
    %cst_20 = arith.constant dense<0.000000e+00> : vector<8x256xf32>
    %74 = tpu.matmul %11, %73, %cst_20 {dimension_numbers = #tpu.dot_dimension_numbers<[1], [0], [0], [1], [0, 0, 1, 1], [], []>} : vector<8x8xf32>, vector<8x256xf32>, vector<8x256xf32> -> vector<8x256xf32>
    %75 = vector.extract_strided_slice %74 {offsets = [0, 0], sizes = [1, 256], strides = [1, 1]} : vector<8x256xf32> to vector<1x256xf32>
    %76 = vector.extract_strided_slice %74 {offsets = [1, 0], sizes = [1, 256], strides = [1, 1]} : vector<8x256xf32> to vector<1x256xf32>
    %77 = vector.extract_strided_slice %74 {offsets = [2, 0], sizes = [1, 256], strides = [1, 1]} : vector<8x256xf32> to vector<1x256xf32>
    %78 = vector.extract_strided_slice %74 {offsets = [3, 0], sizes = [1, 256], strides = [1, 1]} : vector<8x256xf32> to vector<1x256xf32>
    %79 = vector.extract_strided_slice %74 {offsets = [4, 0], sizes = [1, 256], strides = [1, 1]} : vector<8x256xf32> to vector<1x256xf32>
    %cst_21 = arith.constant 5.000000e-01 : f32
    %80 = vector.broadcast %cst_21 : f32 to vector<1x256xf32>
    %81 = arith.cmpf oge, %62, %80 : vector<1x256xf32>
    %cst_22 = arith.constant 4.000000e-01 : f32
    %82 = vector.broadcast %cst_22 : f32 to vector<1x256xf32>
    %83 = arith.cmpf olt, %62, %82 : vector<1x256xf32>
    %84 = arith.extui %81 : vector<1x256xi1> to vector<1x256xi32>
    %85 = arith.sitofp %84 : vector<1x256xi32> to vector<1x256xf32>
    %86 = vector.shape_cast %85 : vector<1x256xf32> to vector<1x1x256xf32>
    %cst_23 = arith.constant dense<0.000000e+00> : vector<1xf32>
    %87 = vector.multi_reduction <add>, %86, %cst_23 [1, 2] : vector<1x1x256xf32> to vector<1xf32>
    %88 = vector.shape_cast %87 : vector<1xf32> to vector<1x1x1xf32>
    %89 = vector.extract %88[0, 0, 0] : f32 from vector<1x1x1xf32>
    %90 = math.absf %4 : vector<8x256xf32>
    %cst_24 = arith.constant 0.000000e+00 : f32
    %91 = vector.broadcast %cst_24 : f32 to vector<8x256xf32>
    %92 = arith.subf %91, %90 : vector<8x256xf32>
    %93 = math.exp %92 : vector<8x256xf32>
    %cst_25 = arith.constant 1.000000e+00 : f32
    %94 = vector.broadcast %cst_25 : f32 to vector<8x256xf32>
    %95 = arith.addf %94, %93 : vector<8x256xf32>
    %96 = math.log %95 : vector<8x256xf32>
    %cst_26 = arith.constant 0.000000e+00 : f32
    %97 = vector.broadcast %cst_26 : f32 to vector<8x256xf32>
    %98 = arith.minimumf %4, %97 : vector<8x256xf32>
    %99 = arith.subf %98, %96 : vector<8x256xf32>
    %cst_27 = arith.constant -9.21034049 : f32
    %cst_28 = arith.constant -1.000050e-04 : f32
    %100 = vector.broadcast %cst_27 : f32 to vector<8x256xf32>
    %101 = arith.maximumf %100, %99 : vector<8x256xf32>
    %102 = vector.broadcast %cst_28 : f32 to vector<8x256xf32>
    %103 = arith.minimumf %102, %101 : vector<8x256xf32>
    %cst_29 = arith.constant 0.000000e+00 : f32
    %104 = vector.broadcast %cst_29 : f32 to vector<8x256xf32>
    %105 = arith.subf %104, %4 : vector<8x256xf32>
    %cst_30 = arith.constant 0.000000e+00 : f32
    %106 = vector.broadcast %cst_30 : f32 to vector<8x256xf32>
    %107 = arith.minimumf %105, %106 : vector<8x256xf32>
    %108 = arith.subf %107, %96 : vector<8x256xf32>
    %cst_31 = arith.constant -9.21034049 : f32
    %cst_32 = arith.constant -1.000050e-04 : f32
    %109 = vector.broadcast %cst_31 : f32 to vector<8x256xf32>
    %110 = arith.maximumf %109, %108 : vector<8x256xf32>
    %111 = vector.broadcast %cst_32 : f32 to vector<8x256xf32>
    %112 = arith.minimumf %111, %110 : vector<8x256xf32>
    %cst_33 = arith.constant 1.000000e+00 : f32
    %113 = vector.broadcast %cst_33 : f32 to vector<8x256xf32>
    %114 = arith.addf %113, %93 : vector<8x256xf32>
    %115 = tpu.reciprocal %114 {approx = true} : vector<8x256xf32> -> vector<8x256xf32>
    %cst_34 = arith.constant 0.000000e+00 : f32
    %116 = vector.broadcast %cst_34 : f32 to vector<8x256xf32>
    %117 = arith.cmpf oge, %4, %116 : vector<8x256xf32>
    %118 = arith.mulf %93, %115 : vector<8x256xf32>
    %119 = arith.select %117, %115, %118 : vector<8x256xi1>, vector<8x256xf32>
    %cst_35 = arith.constant 9.99999974E-5 : f32
    %cst_36 = arith.constant 0.999899983 : f32
    %120 = vector.broadcast %cst_35 : f32 to vector<8x256xf32>
    %121 = arith.maximumf %120, %119 : vector<8x256xf32>
    %122 = vector.broadcast %cst_36 : f32 to vector<8x256xf32>
    %123 = arith.minimumf %122, %121 : vector<8x256xf32>
    %124 = tpu.iota {dimensions = array<i32: 0>} : vector<8x256xi32>
    %125 = arith.fptosi %79 : vector<1x256xf32> to vector<1x256xi32>
    %126 = vector.broadcast %125 : vector<1x256xi32> to vector<8x256xi32>
    %127 = arith.cmpi eq, %124, %126 : vector<8x256xi32>
    %128 = vector.broadcast %81 : vector<1x256xi1> to vector<8x256xi1>
    %129 = arith.andi %128, %127 : vector<8x256xi1>
    %130 = arith.ori %81, %83 : vector<1x256xi1>
    %cst_37 = arith.constant 2.500000e-01 : f32
    %cst_38 = arith.constant 7.500000e-01 : f32
    %131 = vector.broadcast %cst_37 : f32 to vector<8x256xf32>
    %132 = vector.broadcast %cst_38 : f32 to vector<8x256xf32>
    %133 = arith.select %129, %131, %132 : vector<8x256xi1>, vector<8x256xf32>
    %cst_39 = arith.constant 1.000000e+00 : f32
    %134 = vector.broadcast %cst_39 : f32 to vector<8x256xf32>
    %135 = arith.subf %134, %123 : vector<8x256xf32>
    %136 = arith.select %129, %135, %123 : vector<8x256xi1>, vector<8x256xf32>
    %cst_40 = arith.constant 0.000000e+00 : f32
    %137 = vector.broadcast %cst_40 : f32 to vector<8x256xf32>
    %138 = arith.subf %137, %103 : vector<8x256xf32>
    %cst_41 = arith.constant 0.000000e+00 : f32
    %139 = vector.broadcast %cst_41 : f32 to vector<8x256xf32>
    %140 = arith.subf %139, %112 : vector<8x256xf32>
    %141 = arith.select %129, %138, %140 : vector<8x256xi1>, vector<8x256xf32>
    %142 = arith.mulf %136, %136 : vector<8x256xf32>
    %143 = arith.mulf %133, %142 : vector<8x256xf32>
    %144 = arith.mulf %143, %141 : vector<8x256xf32>
    %cst_42 = arith.constant 0.000000e+00 : f32
    %145 = vector.shape_cast %130 : vector<1x256xi1> to vector<1x256xi1>
    %146 = vector.broadcast %145 : vector<1x256xi1> to vector<8x256xi1>
    %147 = vector.broadcast %cst_42 : f32 to vector<8x256xf32>
    %148 = arith.select %146, %144, %147 : vector<8x256xi1>, vector<8x256xf32>
    %149 = vector.shape_cast %148 : vector<8x256xf32> to vector<1x8x256xf32>
    %cst_43 = arith.constant dense<0.000000e+00> : vector<1xf32>
    %150 = vector.multi_reduction <add>, %149, %cst_43 [1, 2] : vector<1x8x256xf32> to vector<1xf32>
    %151 = vector.shape_cast %150 : vector<1xf32> to vector<1x1x1xf32>
    %152 = vector.extract %151[0, 0, 0] : f32 from vector<1x1x1xf32>
    %153 = arith.subf %77, %75 : vector<1x256xf32>
    %154 = arith.subf %78, %76 : vector<1x256xf32>
    %cst_44 = arith.constant 5.000000e-01 : f32
    %155 = vector.broadcast %cst_44 : f32 to vector<1x256xf32>
    %156 = arith.mulf %155, %153 : vector<1x256xf32>
    %157 = arith.addf %75, %156 : vector<1x256xf32>
    %cst_45 = arith.constant 5.000000e-01 : f32
    %158 = vector.broadcast %cst_45 : f32 to vector<1x256xf32>
    %159 = arith.mulf %158, %154 : vector<1x256xf32>
    %160 = arith.addf %76, %159 : vector<1x256xf32>
    %cst_46 = arith.constant 1.000000e+00 : f32
    %161 = vector.broadcast %cst_46 : f32 to vector<1x256xf32>
    %162 = arith.maximumf %153, %161 : vector<1x256xf32>
    %cst_47 = arith.constant 1.000000e+00 : f32
    %163 = vector.broadcast %cst_47 : f32 to vector<1x256xf32>
    %164 = arith.maximumf %154, %163 : vector<1x256xf32>
    %165 = arith.subf %157, %17 : vector<1x256xf32>
    %166 = arith.divf %165, %19 : vector<1x256xf32>
    %167 = arith.subf %160, %16 : vector<1x256xf32>
    %168 = arith.divf %167, %18 : vector<1x256xf32>
    %169 = arith.divf %162, %19 : vector<1x256xf32>
    %170 = math.log %169 : vector<1x256xf32>
    %171 = arith.divf %164, %18 : vector<1x256xf32>
    %172 = math.log %171 : vector<1x256xf32>
    %173 = vector.extract_strided_slice %6 {offsets = [0, 0], sizes = [1, 256], strides = [1, 1]} : vector<4x256xf32> to vector<1x256xf32>
    %174 = arith.subf %168, %173 : vector<1x256xf32>
    %175 = math.absf %174 : vector<1x256xf32>
    %cst_48 = arith.constant 0.111111112 : f32
    %176 = vector.broadcast %cst_48 : f32 to vector<1x256xf32>
    %177 = arith.cmpf ole, %175, %176 : vector<1x256xf32>
    %cst_49 = arith.constant 4.500000e+00 : f32
    %178 = vector.broadcast %cst_49 : f32 to vector<1x256xf32>
    %179 = arith.mulf %178, %175 : vector<1x256xf32>
    %180 = arith.mulf %179, %175 : vector<1x256xf32>
    %cst_50 = arith.constant 0.055555556 : f32
    %181 = vector.broadcast %cst_50 : f32 to vector<1x256xf32>
    %182 = arith.subf %175, %181 : vector<1x256xf32>
    %183 = arith.select %177, %180, %182 : vector<1x256xi1>, vector<1x256xf32>
    %184 = vector.extract_strided_slice %6 {offsets = [1, 0], sizes = [1, 256], strides = [1, 1]} : vector<4x256xf32> to vector<1x256xf32>
    %185 = arith.subf %166, %184 : vector<1x256xf32>
    %186 = math.absf %185 : vector<1x256xf32>
    %cst_51 = arith.constant 0.111111112 : f32
    %187 = vector.broadcast %cst_51 : f32 to vector<1x256xf32>
    %188 = arith.cmpf ole, %186, %187 : vector<1x256xf32>
    %cst_52 = arith.constant 4.500000e+00 : f32
    %189 = vector.broadcast %cst_52 : f32 to vector<1x256xf32>
    %190 = arith.mulf %189, %186 : vector<1x256xf32>
    %191 = arith.mulf %190, %186 : vector<1x256xf32>
    %cst_53 = arith.constant 0.055555556 : f32
    %192 = vector.broadcast %cst_53 : f32 to vector<1x256xf32>
    %193 = arith.subf %186, %192 : vector<1x256xf32>
    %194 = arith.select %188, %191, %193 : vector<1x256xi1>, vector<1x256xf32>
    %195 = arith.addf %183, %194 : vector<1x256xf32>
    %196 = vector.extract_strided_slice %6 {offsets = [2, 0], sizes = [1, 256], strides = [1, 1]} : vector<4x256xf32> to vector<1x256xf32>
    %197 = arith.subf %172, %196 : vector<1x256xf32>
    %198 = math.absf %197 : vector<1x256xf32>
    %cst_54 = arith.constant 0.111111112 : f32
    %199 = vector.broadcast %cst_54 : f32 to vector<1x256xf32>
    %200 = arith.cmpf ole, %198, %199 : vector<1x256xf32>
    %cst_55 = arith.constant 4.500000e+00 : f32
    %201 = vector.broadcast %cst_55 : f32 to vector<1x256xf32>
    %202 = arith.mulf %201, %198 : vector<1x256xf32>
    %203 = arith.mulf %202, %198 : vector<1x256xf32>
    %cst_56 = arith.constant 0.055555556 : f32
    %204 = vector.broadcast %cst_56 : f32 to vector<1x256xf32>
    %205 = arith.subf %198, %204 : vector<1x256xf32>
    %206 = arith.select %200, %203, %205 : vector<1x256xi1>, vector<1x256xf32>
    %207 = arith.addf %195, %206 : vector<1x256xf32>
    %208 = vector.extract_strided_slice %6 {offsets = [3, 0], sizes = [1, 256], strides = [1, 1]} : vector<4x256xf32> to vector<1x256xf32>
    %209 = arith.subf %170, %208 : vector<1x256xf32>
    %210 = math.absf %209 : vector<1x256xf32>
    %cst_57 = arith.constant 0.111111112 : f32
    %211 = vector.broadcast %cst_57 : f32 to vector<1x256xf32>
    %212 = arith.cmpf ole, %210, %211 : vector<1x256xf32>
    %cst_58 = arith.constant 4.500000e+00 : f32
    %213 = vector.broadcast %cst_58 : f32 to vector<1x256xf32>
    %214 = arith.mulf %213, %210 : vector<1x256xf32>
    %215 = arith.mulf %214, %210 : vector<1x256xf32>
    %cst_59 = arith.constant 0.055555556 : f32
    %216 = vector.broadcast %cst_59 : f32 to vector<1x256xf32>
    %217 = arith.subf %210, %216 : vector<1x256xf32>
    %218 = arith.select %212, %215, %217 : vector<1x256xi1>, vector<1x256xf32>
    %219 = arith.addf %207, %218 : vector<1x256xf32>
    %220 = arith.mulf %219, %85 : vector<1x256xf32>
    %221 = vector.shape_cast %220 : vector<1x256xf32> to vector<1x1x256xf32>
    %cst_60 = arith.constant dense<0.000000e+00> : vector<1xf32>
    %222 = vector.multi_reduction <add>, %221, %cst_60 [1, 2] : vector<1x1x256xf32> to vector<1xf32>
    %223 = vector.shape_cast %222 : vector<1xf32> to vector<1x1x1xf32>
    %224 = vector.extract %223[0, 0, 0] : f32 from vector<1x1x1xf32>
    %c0_61 = arith.constant 0 : index
    %c0_62 = arith.constant 0 : index
    %225 = vector.load %arg8[%c0_61, %c0_62] : memref<1x1xf32, #tpu.memory_space<vmem>>, vector<1x1xf32>
    %226 = vector.broadcast %152 : f32 to vector<1x1xf32>
    %227 = arith.addf %225, %226 : vector<1x1xf32>
    %c0_63 = arith.constant 0 : index
    %c0_64 = arith.constant 0 : index
    %228 = vector.load %arg8[%c0_63, %c0_64] : memref<1x1xf32, #tpu.memory_space<vmem>>, vector<1x1xf32>
    tpu.vector_store %arg8[%c0_63, %c0_64], %227 {strides = array<i32>} : memref<1x1xf32, #tpu.memory_space<vmem>>, vector<1x1xf32>,
    %c0_65 = arith.constant 0 : index
    %c0_66 = arith.constant 0 : index
    %229 = vector.load %arg9[%c0_65, %c0_66] : memref<1x1xf32, #tpu.memory_space<vmem>>, vector<1x1xf32>
    %230 = vector.broadcast %224 : f32 to vector<1x1xf32>
    %231 = arith.addf %229, %230 : vector<1x1xf32>
    %c0_67 = arith.constant 0 : index
    %c0_68 = arith.constant 0 : index
    %232 = vector.load %arg9[%c0_67, %c0_68] : memref<1x1xf32, #tpu.memory_space<vmem>>, vector<1x1xf32>
    tpu.vector_store %arg9[%c0_67, %c0_68], %231 {strides = array<i32>} : memref<1x1xf32, #tpu.memory_space<vmem>>, vector<1x1xf32>,
    %c0_69 = arith.constant 0 : index
    %c0_70 = arith.constant 0 : index
    %233 = vector.load %arg10[%c0_69, %c0_70] : memref<1x1xf32, #tpu.memory_space<vmem>>, vector<1x1xf32>
    %234 = vector.broadcast %89 : f32 to vector<1x1xf32>
    %235 = arith.addf %233, %234 : vector<1x1xf32>
    %c0_71 = arith.constant 0 : index
    %c0_72 = arith.constant 0 : index
    %236 = vector.load %arg10[%c0_71, %c0_72] : memref<1x1xf32, #tpu.memory_space<vmem>>, vector<1x1xf32>
    tpu.vector_store %arg10[%c0_71, %c0_72], %235 {strides = array<i32>} : memref<1x1xf32, #tpu.memory_space<vmem>>, vector<1x1xf32>,
    %c1_i32 = arith.constant 1 : i32
    %237 = arith.cmpi eq, %arg1, %c1_i32 : i32
    %238 = arith.extui %237 : i1 to i32
    %c0_i32_73 = arith.constant 0 : i32
    %239 = arith.cmpi ne, %238, %c0_i32_73 : i32
    scf.if %239 {
      %c0_74 = arith.constant 0 : index
      %c0_75 = arith.constant 0 : index
      %240 = vector.load %arg10[%c0_74, %c0_75] : memref<1x1xf32, #tpu.memory_space<vmem>>, vector<1x1xf32>
      %241 = vector.extract %240[0, 0] : f32 from vector<1x1xf32>
      %c0_76 = arith.constant 0 : index
      %c0_77 = arith.constant 0 : index
      %242 = vector.load %arg8[%c0_76, %c0_77] : memref<1x1xf32, #tpu.memory_space<vmem>>, vector<1x1xf32>
      %243 = vector.extract %242[0, 0] : f32 from vector<1x1xf32>
      %cst_78 = arith.constant 1.000000e+00 : f32
      %244 = arith.maximumf %241, %cst_78 : f32
      %245 = arith.divf %243, %244 : f32
      %cst_79 = arith.constant 0.000000e+00 : f32
      %246 = arith.cmpf ogt, %241, %cst_79 : f32
      %c0_80 = arith.constant 0 : index
      %c0_81 = arith.constant 0 : index
      %247 = vector.load %arg9[%c0_80, %c0_81] : memref<1x1xf32, #tpu.memory_space<vmem>>, vector<1x1xf32>
      %248 = vector.extract %247[0, 0] : f32 from vector<1x1xf32>
      %cst_82 = arith.constant 4.000000e+00 : f32
      %249 = arith.mulf %241, %cst_82 : f32
      %cst_83 = arith.constant 1.000000e+00 : f32
      %250 = arith.maximumf %249, %cst_83 : f32
      %251 = arith.divf %248, %250 : f32
      %cst_84 = arith.constant 0.000000e+00 : f32
      %252 = arith.select %246, %251, %cst_84 : f32
      %cst_85 = arith.constant 1.000000e+00 : f32
      %253 = vector.broadcast %cst_85 : f32 to vector<1x1x1xf32>
      %254 = vector.broadcast %245 : f32 to vector<1x1x1xf32>
      %255 = arith.mulf %254, %253 : vector<1x1x1xf32>
      %256 = vector.broadcast %252 : f32 to vector<1x1x1xf32>
      %257 = arith.mulf %256, %253 : vector<1x1x1xf32>
      %258 = tpu.concatenate %255, %257 in 2 : vector<1x1x1xf32>, vector<1x1x1xf32> -> vector<1x1x2xf32>
      %c0_86 = arith.constant 0 : index
      %c0_87 = arith.constant 0 : index
      %c0_88 = arith.constant 0 : index
      %259 = vector.load %arg7[%c0_86, %c0_87, %c0_88] : memref<1x1x2xf32, #tpu.memory_space<vmem>>, vector<1x1x2xf32>
      tpu.vector_store %arg7[%c0_86, %c0_87, %c0_88], %258 {strides = array<i32>} : memref<1x1x2xf32, #tpu.memory_space<vmem>>, vector<1x1x2xf32>,
    } else {
    }
    return
  }
  func.func @transform_0(%arg0: i32, %arg1: i32) -> (i32, i32, i32) {
    %c0_i32 = arith.constant 0 : i32
    %c0_i32_0 = arith.constant 0 : i32
    return %arg0, %c0_i32, %arg1 : i32, i32, i32
  }
  func.func @transform_1(%arg0: i32, %arg1: i32) -> (i32, i32, i32) {
    %c0_i32 = arith.constant 0 : i32
    %c0_i32_0 = arith.constant 0 : i32
    return %arg0, %c0_i32, %arg1 : i32, i32, i32
  }
  func.func @transform_2(%arg0: i32, %arg1: i32) -> (i32, i32) {
    %c0_i32 = arith.constant 0 : i32
    %c0_i32_0 = arith.constant 0 : i32
    return %c0_i32, %arg1 : i32, i32
  }
  func.func @transform_3(%arg0: i32, %arg1: i32) -> (i32, i32, i32) {
    %c0_i32 = arith.constant 0 : i32
    %c0_i32_0 = arith.constant 0 : i32
    %c0_i32_1 = arith.constant 0 : i32
    return %arg0, %c0_i32, %c0_i32_0 : i32, i32, i32
  }
  func.func @transform_4(%arg0: i32, %arg1: i32) -> (i32, i32, i32) {
    %c0_i32 = arith.constant 0 : i32
    %c0_i32_0 = arith.constant 0 : i32
    %c0_i32_1 = arith.constant 0 : i32
    return %arg0, %c0_i32, %c0_i32_0 : i32, i32, i32
  }
  func.func @transform_5(%arg0: i32, %arg1: i32) -> (i32, i32, i32) {
    %c0_i32 = arith.constant 0 : i32
    %c0_i32_0 = arith.constant 0 : i32
    %c0_i32_1 = arith.constant 0 : i32
    return %arg0, %c0_i32, %c0_i32_0 : i32, i32, i32
  }
}

</mosaic_0001>

<bundles_post_ra>
// kernel: model_with_loss.2
= control target key start
LH: loop header
LB: loop body
LE: loop exit
PB: predicated region body
PF: predicated region fallthrough
CT: control target
= control target key end

     0   :  { %s878_s27 = smov 0   ;;  %s880_s28 = smov 0   ;;  %s958_s0 = inlined_call_operand.vmem [shape: f32[2,4,256], index: 0, kind: input, shape index: {}]   ;;  %s959_s1 = inlined_call_operand.vmem [shape: bf16[32,4], index: 1, kind: input, shape index: {}]   ;;  %s960_s2 = inlined_call_operand.vmem [shape: f32[32,1], index: 2, kind: input, shape index: {}]   ;;  %s961_s3 = inlined_call_operand.vmem [shape: bf16[16,32], index: 3, kind: input, shape index: {}]   ;;  %s962_s4 = inlined_call_operand.vmem [shape: f32[16,1], index: 4, kind: input, shape index: {}]   ;;  %s963_s5 = inlined_call_operand.vmem [shape: bf16[8,32], index: 5, kind: input, shape index: {}]   ;;  %s964_s6 = inlined_call_operand.vmem [shape: f32[8,1], index: 6, kind: input, shape index: {}]   ;;  %s965_s7 = inlined_call_operand.vmem [shape: f32[2,16,256], index: 7, kind: output, shape index: {0}]   ;;  %s966_s8 = inlined_call_operand.vmem [shape: f32[2,8,256], index: 8, kind: output, shape index: {1}]  }
   0x1   :  { %s882_s29 = smov 0  }
   0x2 LB: > { %s31_s30 = sadd.s32 1, %s826_s28  ;;  %p757_p0 = scmp.ge.s32.totalorder %s830_s29, 1  ;;  %s830_s29 = sphi %s882_s29, %s19_s29   ;;  %s826_s28 = sphi %s880_s28, %s968_s28   ;;  %s822_s27 = sphi %s878_s27, %s967_s27  }
   0x3   : > { %p33_p1 = scmp.ge.s32.totalorder %s31_s30, 2  ;;  %p288_p2 = scmp.lt.s32.totalorder %s830_s29, 3 }
   0x5   : > { %s970_s30 = smov (%p33_p1, %s31_s30), 0  ;;  %p289_p3 = pnand %p757_p0, %p288_p2 }
   0x6   : > { %p340_p4 = scmp.lt.s32.totalorder (!%p289_p3), %s822_s27, 1  ;;  %v832_v0 = vmov (!%p289_p3), 0   ;;  %v380_v1 = vld [vmem:[%s960_s2] sm:$0xff] (!%p289_p3)  ;;  %v382_v2 = vld [vmem:[%s960_s2 + $0x10] sm:$0xff] (!%p289_p3)  ;;  %v381_v3 = vld [vmem:[%s960_s2 + $0x8] sm:$0xff] (!%p289_p3)  ;;  %vm421_vm0 = vcmask (!%p289_p3), 1041408  }
   0x7   : > { %292 = sbr.rel (%p289_p3) target bundleno = 483 (0x1e3), region = 48  ;;  %460 = vmatprep.mubr.bf16.mxu0 (!%p289_p3), %v832_v0  ;;  %802 = vset.pattern.permute.xlu0 (!%p289_p3), %v832_v0  ;;  %v383_v4 = vld [vmem:[%s960_s2 + $0x18] sm:$0xff] (!%p289_p3)  ;;  %v495_v8 = vld [vmem:[%s962_s4] sm:$0xff] (!%p289_p3)  ;;  %v496_v11 = vld [vmem:[%s962_s4 + $0x8] sm:$0xff] (!%p289_p3)  ;;  %vm414_vm1 = vcmask (!%p289_p3), 31744   ;;  %vm512_vm2 = vcmask (!%p289_p3), 261120  }
   0x8   : > { %803 = vset.pattern.permute.xlu1 (!%p289_p3), %v832_v0  ;;  %548 = vmatprep.mubr.bf16.mxu1 (!%p289_p3), %v832_v0  ;;  %v805_v12 = vld [vmem:[%s959_s1] sm:$0xff] (!%p289_p3)   ;;  %v806_v14 = vld [vmem:[%s959_s1 + $0x8] sm:$0xff] (!%p289_p3)  }
   0x9   : > { %386 = vperm.xlu0 (!%p289_p3), %802, %v380_v1   ;;  %396 = vperm.xlu1 (!%p289_p3), %803, %v382_v2   ;;  %v564_v13 = vld [vmem:[%s964_s6] sm:$0xff] (!%p289_p3) }
   0xa   : > { %v807_v47 = vld [vmem:[%s961_s3] sm:$0xff] (!%p289_p3)  }
   0xb   : > { %v563_v48 = vld [vmem:[%s963_s5] sm:$0xf] (!%p289_p3) }
   0xd   : > { %391 = vperm.xlu0 (!%p289_p3), %802, %v381_v3   ;;  %401 = vperm.xlu1 (!%p289_p3), %803, %v383_v4  }
   0xe   : > { %s972_s27 = smov (!%p340_p4, %s822_s27), 1 }
   0xf   : > { %s774_s13 = sshll.u32 %s972_s27, 3  ;;  %s775_s17 = sshll.u32 %s972_s27, 5 }
  0x10   : > { %s347_s18 = scalar_lea.vmem %s958_s0, %s774_s13  ;;  %s357_s20 = scalar_lea.vmem %s965_s7, %s775_s17 }
  0x11   : > { %v370_v5 = vld [vmem:[%s347_s18] sm:$0xff]  ;;  %499 = vperm.xlu0 %802, %v495_v8   ;;  %504 = vperm.xlu1 %803, %v496_v11   ;;  %s776_s21 = sshll.u32 %s972_s27, 4 }
  0x12   : > { %v372_v6 = vcombine.high %v370_v5, %v370_v5  ;;  %v374_v7 = vpack.c.bf16 %v370_v5, %v370_v5  ;;  %s367_s24 = scalar_lea.vmem %s966_s8, %s776_s21 }
  0x14   : > { %v375_v9 = vpack.c.bf16 %v372_v6, %v372_v6  ;;  %v423_v10 = vsel %vm421_vm0, %v374_v7, 0 }
  0x15   : > { %567 = vperm.xlu0 %802, %v564_v13  }
  0x16   : > { %766 = vmatprep.subr.msk.bf16.mxu0 %vm421_vm0, %v375_v9 }
  0x17   : > { %429 = vmatpush1.bf16.msra.mxu0 %v423_v10 }
  0x1a   : > { %767 = vmatmul.mubr.msk.bf16.vlgmr.msra.gmra.mrb[0].mxu0 %vm414_vm1, %v805_v12 }
  0x1b   : > { %470 = vmatprep.mubr.bf16.mxu0 %v832_v0 }
  0x22   : > { %768 = vmatmul.mubr.msk.bf16.gmra.mrb[4].mxu0 %vm414_vm1, %v806_v14 }
  0x88   : > { %v387_v15 = vpop.permute.xlu0 %386  ;;  %v397_v24 = vpop.permute.xlu1 %396 }
  0x8c   : > { %v392_v19 = vpop.permute.xlu0 %391  ;;  %v402_v35 = vpop.permute.xlu1 %401 }
  0x90   : > { %v500_v49 = vpop.permute.xlu0 %499  ;;  %v505_v53 = vpop.permute.xlu1 %504 }
  0x94   : > { %v568_v59 = vpop.permute.xlu0 %567 }
  0xed   : > { %v462_v16 = vpop.f32.mrb[0].mxu0 }
  0xee   : > { %v463_v17 = vadd.f32 %v462_v16, %v387_v15  ;;  %v464_v18 = vpop.f32.mrb[1].mxu0 }
  0xef   : > { %v465_v20 = vadd.f32 %v464_v18, %v387_v15  ;;  %v466_v21 = vpop.f32.mrb[2].mxu0 }
  0xf0   : > { %v467_v22 = vadd.f32 %v466_v21, %v392_v19  ;;  %v468_v23 = vpop.f32.mrb[3].mxu0  ;;  %v481_v26 = vmax.f32 %v463_v17, 0.0 }
  0xf1   : > { %v469_v25 = vadd.f32 %v468_v23, %v392_v19  ;;  %v482_v28 = vmax.f32 %v465_v20, 0.0 }
  0xf2   : > { %v483_v27 = vmax.f32 %v467_v22, 0.0 }
  0xf3   : > { %v484_v29 = vmax.f32 %v469_v25, 0.0 }
  0xf4   : > { %v489_v30 = vpack.c.bf16 %v483_v27, %v481_v26 }
  0xf5   : > { %v472_v31 = vpop.f32.mrb[4].mxu0  ;;  %v490_v32 = vpack.c.bf16 %v484_v29, %v482_v28 }
  0xf6   : > { %v473_v33 = vadd.f32 %v472_v31, %v397_v24  ;;  %v474_v34 = vpop.f32.mrb[5].mxu0 }
  0xf7   : > { %v475_v36 = vadd.f32 %v474_v34, %v397_v24  ;;  %v476_v37 = vpop.f32.mrb[6].mxu0  ;;  %516 = vmatprep.subr.bf16.mxu1 %v490_v32 }
  0xf8   : > { %v477_v38 = vadd.f32 %v476_v37, %v402_v35  ;;  %v478_v39 = vpop.f32.mrb[7].mxu0  ;;  %517 = vmatpush1.bf16.msra.mxu1 %v489_v30  ;;  %v485_v41 = vmax.f32 %v473_v33, 0.0 }
  0xf9   : > { %v479_v40 = vadd.f32 %v478_v39, %v402_v35  ;;  %v486_v43 = vmax.f32 %v475_v36, 0.0 }
  0xfa   : > { %v487_v42 = vmax.f32 %v477_v38, 0.0 }
  0xfb   : > { %v488_v44 = vmax.f32 %v479_v40, 0.0 }
  0xfc   : > { %v491_v45 = vpack.c.bf16 %v487_v42, %v485_v41 }
  0xfd   : > { %v492_v46 = vpack.c.bf16 %v488_v44, %v486_v43 }
  0xff   : > { %518 = vmatprep.subr.bf16.mxu1 %v492_v46 }
 0x100   : > { %519 = vmatpush1.bf16.msra.mxu1 %v491_v45 }
 0x101   : > { %573 = vmatprep.subr.bf16.mxu1 %v490_v32 }
 0x103   : > { %770 = vmatmul.mubr.msk.bf16.vlgmr.msra.gmra.mrb[0].mxu1 %vm512_vm2, %v807_v47 }
 0x104   : > { %574 = vmatpush1.bf16.msra.mxu1 %v489_v30  ;;  %605 = vmatprep.mubr.bf16.mxu1 %v832_v0 }
 0x105   : > { %575 = vmatprep.subr.bf16.mxu1 %v492_v46 }
 0x108   : > { %576 = vmatpush1.bf16.msra.mxu1 %v491_v45 }
 0x10b   : > { %771 = vmatmul.mubr.msk.bf16.vlgmr.msra.gmra.mrb[4].mxu1 %vm512_vm2, %v563_v48 }
 0x1d6   : > { %v550_v50 = vpop.f32.mrb[0].mxu1 }
 0x1d7   : > { %v551_v51 = vadd.f32 %v550_v50, %v500_v49  ;;  %v552_v52 = vpop.f32.mrb[1].mxu1 }
 0x1d8   : > { %v553_v54 = vadd.f32 %v552_v52, %v500_v49  ;;  %v554_v55 = vpop.f32.mrb[2].mxu1 }
 0x1d9   : > { %559 = vst [vmem:[%s357_s20] sm:$0xff] %v551_v51  ;;  %v555_v56 = vadd.f32 %v554_v55, %v505_v53  ;;  %v556_v57 = vpop.f32.mrb[3].mxu1 }
 0x1da   : > { %560 = vst [vmem:[%s357_s20 + $0x8] sm:$0xff] %v553_v54  ;;  %v557_v58 = vadd.f32 %v556_v57, %v505_v53 }
 0x1db   : > { %561 = vst [vmem:[%s357_s20 + $0x10] sm:$0xff] %v555_v56 }
 0x1dc   : > { %562 = vst [vmem:[%s357_s20 + $0x18] sm:$0xff] %v557_v58 }
 0x1de   : > { %v607_v60 = vpop.f32.mrb[4].mxu1 }
 0x1df   : > { %v608_v61 = vadd.f32 %v607_v60, %v568_v59  ;;  %v609_v62 = vpop.f32.mrb[5].mxu1 }
 0x1e0   : > { %v610_v63 = vadd.f32 %v609_v62, %v568_v59  ;;  %v611_v0 = vpop.f32.mrb[6].mxu1 }
 0x1e1   : > { %614 = vst [vmem:[%s367_s24] sm:$0xff] %v608_v61  ;;  %v612_v1 = vpop.f32.mrb[7].mxu1 }
 0x1e2   : > { %615 = vst [vmem:[%s367_s24 + $0x8] sm:$0xff] %v610_v63 }
 0x1e3 PF: > { %s19_s29 = sadd.s32 1, %s830_s29   ;;  %s967_s27 = smov %s826_s28 }
 0x1e4   : > { %p16_p5 = scmp.ge.s32.totalorder %s19_s29, 4   ;;  %s968_s28 = smov %s970_s30 }
 0x1e6   :  { %18 = sbr.rel (!%p16_p5) target bundleno = 2 (0x2), region = 90 }

// kernel: model_with_loss.3
= control target key start
LH: loop header
LB: loop body
LE: loop exit
PB: predicated region body
PF: predicated region fallthrough
CT: control target
= control target key end

     0   :  { %s1294_s18 = smov 0   ;;  %s1296_s19 = smov 0   ;;  %s1572_s0 = inlined_call_operand.vmem [shape: f32[2,8,512], index: 0, kind: input, shape index: {}]   ;;  %s1573_s1 = inlined_call_operand.vmem [shape: f32[2,4,512], index: 1, kind: input, shape index: {}]   ;;  %s1574_s2 = inlined_call_operand.vmem [shape: f32[8,512], index: 2, kind: input, shape index: {}]   ;;  %s1575_s3 = inlined_call_operand.vmem [shape: f32[2,8,8], index: 3, kind: input, shape index: {}]   ;;  %s1576_s4 = inlined_call_operand.vmem [shape: f32[2,8,8], index: 4, kind: input, shape index: {}]   ;;  %s1577_s5 = inlined_call_operand.vmem [shape: f32[2,1,2], index: 5, kind: output, shape index: {}]  }
   0x1   :  { %s1298_s20 = smov 0   ;;  %s1300_s21 = smov 0  }
   0x2   :  { %s1302_s22 = smov 0  }
   0x3 LB: > { %s24_s23 = sadd.s32 1, %s1242_s20  ;;  %s27_s24 = sadd.s32 1, %s1246_s21  ;;  %s1250_s22 = sphi %s1302_s22, %s15_s22   ;;  %s1246_s21 = sphi %s1300_s21, %s1587_s21   ;;  %s1242_s20 = sphi %s1298_s20, %s1586_s20   ;;  %s1238_s19 = sphi %s1296_s19, %s1585_s19   ;;  %s1234_s18 = sphi %s1294_s18, %s1584_s18  }
   0x4   : > { %p25_p0 = scmp.ge.s32.totalorder %s24_s23, 2  ;;  %p1064_p1 = scmp.ge.s32.totalorder %s1250_s22, 1 }
   0x5   : > { %p252_p2 = scmp.lt.s32.totalorder %s1250_s22, 5 }
   0x6   : > { %s1589_s23 = smov (%p25_p0, %s24_s23), 0  ;;  %s1591_s24 = smov (!%p25_p0, %s27_s24), %s1246_s21 }
   0x7   : > { %p253_p3 = pnand %p1064_p1, %p252_p2  ;;  %p29_p4 = scmp.ge.s32.totalorder %s1591_s24, 2 }
   0x8   : > { %s1065_s25 = sshll.u32 (!%p253_p3), %s1234_s18, 1  ;;  %p305_p5 = scmp.lt.s32.totalorder (!%p253_p3), %s1238_s19, 1 }
   0x9   : > { %s1593_s24 = smov (%p29_p4, %s1591_s24), 0  ;;  %256 = sbr.rel (%p253_p3) target bundleno = 977 (0x3d1), region = 40 }
   0xa   : > { %p307_p6 = scmp.lt.s32.totalorder (!%p253_p3), %s1065_s25, 3  ;;  %p1075_p7 = scmp.ne.s32.totalorder (!%p253_p3), %s1234_s18, 0 }
  0x10   : > { %s1595_s19 = smov (!%p305_p5, %s1238_s19), 1  ;;  %s1597_s25 = smov (!%p307_p6, %s1065_s25), 3 }
  0x11   : > { %s1066_s26 = sshll.u32 %s1595_s19, 2  ;;  %s1073_s27 = sshll.u32 %s1595_s19, 3  ;;  %vm345_vm0 = vcmask (!%p1075_p7), 0   ;;  %v1252_v0 = vmov (!%p1075_p7), 0.0  }
  0x12   : > { %s310_s28 = sadd.s32 %s1066_s26, %s1597_s25  ;;  %s1072_s29 = sshll.u32 %s1597_s25, 3  ;;  %346 = vst.msk [vmem:[#allocation2] sm:$0x1] (!%p1075_p7), %vm345_vm0, %v1252_v0  ;;  %347 = vst.msk [vmem:[#allocation3] sm:$0x1] (!%p1075_p7), %vm345_vm0, %v1252_v0 }
  0x13   : > { %s1067_s30 = sshll.u32 %s310_s28, 3  ;;  %s1070_s6 = sshll.u32 %s310_s28, 2  ;;  %348 = vst.msk [vmem:[#allocation4] sm:$0x1] (!%p1075_p7), %vm345_vm0, %v1252_v0 }
  0x14   : > { %s1334_s9 = scalar_lea.vmem %s1572_s0, %s1067_s30  ;;  %s1339_s12 = scalar_lea.vmem %s1573_s1, %s1070_s6 }
  0x15   : > { %s1344_s15 = scalar_lea.vmem %s1574_s2, %s1072_s29  ;;  %s333_s25 = scalar_lea.vmem %s1575_s3, %s1073_s27 }
  0x16   : > { %s1352_s7 = scalar_lea.vmem %s1576_s4, %s1073_s27  ;;  %s340_s10 = scalar_lea.vmem %s1577_s5, %s1595_s19 }
  0x17   : > { %344 = sbr.rel (%p1075_p7) target bundleno = 30 (0x1e), region = 44 }
  0x1e PF: > { %v354_v1 = vld [vmem:[%s333_s25] sm:$0xff]  ;;  %s1253_s29 = smov 2   ;;  %v1254_v2 = vmov 2   ;;  %v1255_v3 = vmov 3   ;;  %v1256_v4 = vmov 0   ;;  %v1257_v5 = vmov 1  }
  0x1f   : > { %432 = vrot.lane.b32.xlu0 %v354_v1, %s1253_s29  ;;  %1166 = vset.pattern.permute.xlu1 %v1254_v2  ;;  %s1258_s27 = smov 127   ;;  %vm356_vm1 = vcmp.ge.f32.partialorder %v354_v1, 0.0  ;;  %v1259_v9 = vmov 4   ;;  %v1260_v12 = vmov 0.0   ;;  %v357_v13 = vlaneseq  ;;  %v1366_v18 = vld [vmem:[%s1344_s15] sm:$0xff]  ;;  %v1369_v19 = vld [vmem:[%s1344_s15 + $0x8] sm:$0xff] }
  0x20   : > { %367 = vperm.xlu1 %1166, %v354_v1   ;;  %1168 = vset.pattern.permute.xlu0 %v1255_v3  ;;  %v464_v8 = vsel %vm356_vm1, 1, %v1256_v4  ;;  %v426_v41 = vrot.slane %v1366_v18, 7  ;;  %v427_v42 = vrot.slane %v1369_v19, 7  ;;  %vm596_vm3 = vcmask 1040384   ;;  %p1091_p8 = scmp.ne.s32.totalorder %s1234_s18, 1 }
  0x21   : > { %581 = vmatprep.mubr.f32.mxu0 %v1260_v12  ;;  %v1360_v15 = vshrl.u32 %v357_v13, 7  ;;  %vm513_vm0 = vcmask 64512   ;;  %vm903_vm1 = vcmask 0   ;;  %s1263_s13 = smov (!%p1091_p8), 1.0  }
  0x22   : > { %v430_v48 = vmul.f32 %v426_v41, %v1366_v18  ;;  %v431_v49 = vmul.f32 %v427_v42, %v1369_v19 }
  0x23   : > { %v1363_v16 = vsub.s32 3, %v1360_v15  ;;  %v1372_v20 = vsub.s32 1, %v1360_v15  ;;  %v1375_v21 = vsub.s32 0, %v1360_v15  ;;  %v1378_v22 = vsub.s32 2, %v1360_v15 }
  0x24   : > { %1167 = vset.pattern.permute.xlu1 %v1256_v4  ;;  %v1399_v45 = vsub.s32 7, %v1360_v15 }
  0x25   : > { %381 = vperm.xlu1 %1167, %v354_v1   ;;  %v360_v23 = vrot.slane %v1366_v18, %v1363_v16  ;;  %v364_v24 = vrot.slane %v1369_v19, %v1363_v16  ;;  %v375_v25 = vrot.slane %v1366_v18, %v1372_v20  ;;  %v379_v26 = vrot.slane %v1369_v19, %v1372_v20 }
  0x26   : > { %v407_v27 = vrot.slane %v1366_v18, %v1375_v21  ;;  %v411_v28 = vrot.slane %v1369_v19, %v1375_v21  ;;  %v393_v30 = vrot.slane %v1366_v18, %v1378_v22  ;;  %v397_v31 = vrot.slane %v1369_v19, %v1378_v22 }
  0x27   : > { %v444_v54 = vrot.slane %v430_v48, %v1399_v45  ;;  %v448_v55 = vrot.slane %v431_v49, %v1399_v45  ;;  %v355_v49 = vld [vmem:[%s1352_s7] sm:$0xff] }
  0x29   : > { %1169 = vset.pattern.permute.xlu1 %v1257_v5 }
  0x2a   : > { %413 = vperm.xlu1 %1169, %v354_v1  }
  0x2e   : > { %1170 = vset.pattern.permute.xlu1 %v1254_v2 }
  0x91   : > { %v433_v6 = vpop.permute.xlu0 %432 }
  0x92   : > { %v435_v7 = vsub.f32 %v354_v1, %v433_v6 }
  0x94   : > { %437 = vrot.lane.b32.xlu0 %v435_v7, %s1258_s27 }
  0x98   : > { %399 = vperm.xlu0 %1168, %v354_v1  }
  0x9c   : > { %1171 = vset.pattern.permute.xlu0 %v1259_v9 }
  0x9d   : > { %466 = vperm.xlu0 %1171, %v464_v8  }
  0x9f   : > { %v368_v14 = vpop.permute.xlu1 %367 }
  0xa0   : > { %v370_v33 = vmin.f32 %v360_v23, %v368_v14  ;;  %v371_v34 = vmin.f32 %v364_v24, %v368_v14 }
  0xa4   : > { %v382_v17 = vpop.permute.xlu1 %381 }
  0xa5   : > { %v384_v35 = vmax.f32 %v375_v25, %v382_v17  ;;  %v385_v36 = vmax.f32 %v379_v26, %v382_v17 }
  0xa7   : > { %v386_v43 = vsub.f32 %v370_v33, %v384_v35  ;;  %v387_v44 = vsub.f32 %v371_v34, %v385_v36 }
  0xa9   : > { %v414_v29 = vpop.permute.xlu1 %413  ;;  %v388_v50 = vmax.f32 %v386_v43, 0.0  ;;  %v389_v51 = vmax.f32 %v387_v44, 0.0 }
  0xaa   : > { %v416_v37 = vmax.f32 %v407_v27, %v414_v29  ;;  %v417_v38 = vmax.f32 %v411_v28, %v414_v29 }
 0x106   : > { %v438_v10 = vpop.permute.xlu0 %437 }
 0x107   : > { %v440_v11 = vmul.f32 %v438_v10, %v435_v7 }
 0x109   : > { %451 = vperm.xlu1 %1170, %v440_v11  }
 0x117   : > { %v400_v32 = vpop.permute.xlu0 %399 }
 0x118   : > { %v402_v39 = vmin.f32 %v393_v30, %v400_v32  ;;  %v403_v40 = vmin.f32 %v397_v31, %v400_v32 }
 0x11a   : > { %v418_v46 = vsub.f32 %v402_v39, %v416_v37  ;;  %v419_v47 = vsub.f32 %v403_v40, %v417_v38 }
 0x11c   : > { %v420_v52 = vmax.f32 %v418_v46, 0.0  ;;  %v421_v53 = vmax.f32 %v419_v47, 0.0  ;;  %v467_v1 = vpop.permute.xlu0 %466 }
 0x11d   : > { %vm468_vm2 = vcmp.eq.s32.totalorder %v467_v1, 1 }
 0x11e   : > { %v422_v57 = vmul.f32 %v420_v52, %v388_v50  ;;  %v423_v58 = vmul.f32 %v421_v53, %v389_v51  ;;  %v1261_v50 = vmov 1.0  }
 0x188   : > { %v452_v56 = vpop.permute.xlu1 %451 }
 0x189   : > { %v454_v59 = vadd.f32 %v452_v56, %v444_v54  ;;  %v455_v60 = vadd.f32 %v452_v56, %v448_v55 }
 0x18b   : > { %v456_v61 = vsub.f32 %v454_v59, %v422_v57  ;;  %v457_v62 = vsub.f32 %v455_v60, %v423_v58  ;;  %v350_v59 = vld [vmem:[%s1334_s9 + $0x8] sm:$0xff] }
 0x18d   : > { %v458_v63 = vmax.f32 %v456_v61, 1e-08  ;;  %v459_v0 = vmax.f32 %v457_v62, 1e-08  ;;  %v610_v61 = vand.u32 2147483647, %v350_v59 }
 0x18f   : > { %1172 = vrcp.f32 %v458_v63  ;;  %v612_v63 = vsub.f32 0.0, %v610_v61  ;;  %v1465_v61 = vsub.s32 4, %v1360_v15 }
 0x190   : > { %1174 = vrcp.f32 %v459_v0 }
 0x191   : > { %v615_v1 = vmul.f32 1.442695, %v612_v63 }
 0x199   : > { %v1173_v2 = vpop.eup %1172 }
 0x19a   : > { %v1175_v3 = vpop.eup %1174  ;;  %v461_v4 = vmul.f32 %v1173_v2, %v422_v57 }
 0x19b   : > { %v463_v5 = vmul.f32 %v1175_v3, %v423_v58  ;;  %v349_v58 = vld [vmem:[%s1334_s9] sm:$0xff] }
 0x19c   : > { %v469_v6 = vsel %vm468_vm2, %v461_v4, -1.0  ;;  %v609_v60 = vand.u32 2147483647, %v349_v58 }
 0x19d   : > { %v470_v7 = vsel %vm468_vm2, %v463_v5, -1.0  ;;  %v471_v8 = vrot.slane %v469_v6, 4  ;;  %vm643_vm2 = vcmp.ge.f32.partialorder %v349_v58, 0.0 }
 0x19e   : > { %v477_v9 = vrot.slane %v470_v7, 4  ;;  %v611_v62 = vsub.f32 0.0, %v609_v60 }
 0x19f   : > { %v472_v10 = vmax.f32 %v469_v6, %v471_v8 }
 0x1a0   : > { %v478_v11 = vmax.f32 %v470_v7, %v477_v9  ;;  %v613_v0 = vmul.f32 1.442695, %v611_v62  ;;  %v631_v9 = vsub.f32 0.0, %v349_v58 }
 0x1a1   : > { %v473_v13 = vrot.slane %v472_v10, 2 }
 0x1a2   : > { %v479_v14 = vrot.slane %v478_v11, 2  ;;  %1176 = vpow2.f32 %v613_v0 }
 0x1a3   : > { %v474_v17 = vmax.f32 %v472_v10, %v473_v13  ;;  %1178 = vpow2.f32 %v615_v1 }
 0x1a4   : > { %v480_v23 = vmax.f32 %v478_v11, %v479_v14  ;;  %v632_v14 = vsub.f32 0.0, %v350_v59 }
 0x1a5   : > { %v475_v24 = vrot.slane %v474_v17, 1 }
 0x1a6   : > { %v481_v25 = vrot.slane %v480_v23, 1 }
 0x1a7   : > { %v1409_v26 = vmax.f32 %v474_v17, %v475_v24  ;;  %v623_v24 = vmin.f32 %v349_v58, 0.0 }
 0x1a8   : > { %v1411_v27 = vmax.f32 %v480_v23, %v481_v25  ;;  %v633_v25 = vmin.f32 %v631_v9, 0.0 }
 0x1a9   : > { %vm485_vm4 = vcmp.eq.f32.partialorder %v469_v6, %v1409_v26  ;;  %vm588_vm5 = vcmp.ge.f32.partialorder %v1409_v26, 0.5  ;;  %v909_v6 = vld [vmem:[#allocation4] sm:$0x1] }
 0x1aa   : > { %vm486_vm6 = vcmp.eq.f32.partialorder %v470_v7, %v1411_v27  ;;  %v487_v28 = vsel %vm485_vm4, %v1360_v15, 8  ;;  %vm589_vm7 = vcmp.ge.f32.partialorder %v1411_v27, 0.5  ;;  %v1421_v29 = vsel %vm588_vm5, 1.0, %v1260_v12 }
 0x1ab   : > { %v488_v30 = vsel %vm486_vm6, %v1360_v15, 8  ;;  %v489_v31 = vrot.slane %v487_v28, 4  ;;  %v1427_v32 = vsel %vm589_vm7, 1.0, %v1260_v12  ;;  %v597_v33 = vsel %vm596_vm3, %v1421_v29, 0.0 }
 0x1ac   : > { %v498_v34 = vrot.slane %v488_v30, 4  ;;  %v598_v35 = vsel %vm596_vm3, %v1427_v32, 0.0  ;;  %v1177_v2 = vpop.eup %1176  ;;  %vm644_vm4 = vcmp.ge.f32.partialorder %v350_v59, 0.0  ;;  %vm590_vm6 = vcmp.lt.f32.partialorder %v1409_v26, 0.4 }
 0x1ad   : > { %vm490_vm8 = vcmp.lt.s32.totalorder %v487_v28, %v489_v31  ;;  %v599_v36 = vadd.f32 %v598_v35, %v597_v33  ;;  %v1179_v3 = vpop.eup %1178  ;;  %v617_v4 = vadd.f32 1.0, %v1177_v2  ;;  %v624_v35 = vmin.f32 %v350_v59, 0.0 }
 0x1ae   : > { %v491_v37 = vsel %vm490_vm8, %v487_v28, %v489_v31  ;;  %vm499_vm9 = vcmp.lt.s32.totalorder %v488_v30, %v498_v34  ;;  %v618_v5 = vadd.f32 1.0, %v1179_v3  ;;  %v725_v28 = vrot.slane %v1366_v18, 5 }
 0x1af   : > { %600 = vadd.xlane.f32.xlu1 %v599_v36  ;;  %v500_v38 = vsel %vm499_vm9, %v488_v30, %v498_v34  ;;  %v492_v39 = vrot.slane %v491_v37, 2  ;;  %1180 = vlog2.f32 %v617_v4  ;;  %v735_v30 = vrot.slane %v1366_v18, 3 }
 0x1b0   : > { %v501_v40 = vrot.slane %v500_v38, 2  ;;  %1182 = vlog2.f32 %v618_v5  ;;  %v726_v31 = vrot.slane %v1369_v19, 5  ;;  %v634_v36 = vmin.f32 %v632_v14, 0.0 }
 0x1b1   : > { %vm493_vm10 = vcmp.lt.s32.totalorder %v491_v37, %v492_v39  ;;  %1184 = vrcp.f32 %v617_v4  ;;  %vm591_vm8 = vcmp.lt.f32.partialorder %v1411_v27, 0.4 }
 0x1b2   : > { %vm502_vm11 = vcmp.lt.s32.totalorder %v500_v38, %v501_v40  ;;  %v494_v12 = vsel %vm493_vm10, %v491_v37, %v492_v39  ;;  %1186 = vrcp.f32 %v618_v5 }
 0x1b3   : > { %v503_v43 = vsel %vm502_vm11, %v500_v38, %v501_v40  ;;  %v495_v44 = vrot.slane %v494_v12, 1  ;;  %v736_v38 = vrot.slane %v1369_v19, 3  ;;  %1188 = vrcp.f32 %v725_v28 }
 0x1b4   : > { %v504_v46 = vrot.slane %v503_v43, 1  ;;  %1190 = vrcp.f32 %v735_v30 }
 0x1b5   : > { %vm496_vm12 = vcmp.lt.s32.totalorder %v494_v12, %v495_v44  ;;  %1192 = vrcp.f32 %v726_v31 }
 0x1b6   : > { %vm505_vm13 = vcmp.lt.s32.totalorder %v503_v43, %v504_v46  ;;  %v497_v47 = vsel %vm496_vm12, %v494_v12, %v495_v44  ;;  %1194 = vrcp.f32 %v736_v38 }
 0x1b7   : > { %v506_v48 = vsel %vm505_vm13, %v503_v43, %v504_v46  ;;  %vm507_vm14 = vcmp.eq.s32.totalorder %v1360_v15, %v497_v47  ;;  %1196 = vrcp.f32 %v426_v41  ;;  %vm1524_vm13 = vmor %vm588_vm5, %vm590_vm6 }
 0x1b8   : > { %vm508_vm15 = vcmp.eq.s32.totalorder %v1360_v15, %v506_v48  ;;  %1198 = vrcp.f32 %v427_v42 }
 0x1b9   : > { %1078 = vmatprep.subr.msk.mxu0 %vm508_vm15, %v1261_v50  ;;  %v1181_v10 = vpop.eup %1180 }
 0x1ba   : > { %1079 = vmatpush1.msk.msra.mxu0 %vm507_vm14, %v1261_v50  ;;  %v1183_v11 = vpop.eup %1182  ;;  %v620_v23 = vmul.f32 0.6931472, %v1181_v10  ;;  %v1452_v50 = vld [vmem:[%s1339_s12] sm:$0xff]  ;;  %vm670_vm14 = vmor %vm589_vm7, %vm591_vm8 }
 0x1bb   : > { %1080 = vmatmul.mubr.msk.f32.vlgmr.msra.gmra.mrb[0].mxu0 %vm513_vm0, %v355_v49  ;;  %v1185_v13 = vpop.eup %1184  ;;  %v622_v33 = vmul.f32 0.6931472, %v1183_v11  ;;  %v855_v26 = vrot.slane %v1452_v50, %v1399_v45 }
 0x1bc   : > { %v1187_v17 = vpop.eup %1186  ;;  %v645_v34 = vmul.f32 %v1185_v13, %v1177_v2  ;;  %v625_v39 = vsub.f32 %v623_v24, %v620_v23  ;;  %v635_v40 = vsub.f32 %v633_v25, %v620_v23 }
 0x1bd   : > { %v646_v37 = vmul.f32 %v1187_v17, %v1179_v3  ;;  %v626_v43 = vsub.f32 %v624_v35, %v622_v33  ;;  %v636_v44 = vsub.f32 %v634_v36, %v622_v33  ;;  %v1189_v0 = vpop.eup %1188  ;;  %v790_v36 = vsub.s32 5, %v1360_v15 }
 0x1be   : > { %v647_v12 = vsel %vm643_vm2, %v1185_v13, %v645_v34  ;;  %v627_v47 = vmax.f32 %v625_v39, -9.2103405  ;;  %v637_v48 = vmax.f32 %v635_v40, -9.2103405  ;;  %v1191_v5 = vpop.eup %1190 }
 0x1bf   : > { %v648_v46 = vsel %vm644_vm4, %v1187_v17, %v646_v37  ;;  %v649_v49 = vmax.f32 %v647_v12, 0.0001  ;;  %v1193_v9 = vpop.eup %1192 }
 0x1c0   : > { %v1195_v14 = vpop.eup %1194 }
 0x1c1   : > { %v651_v59 = vmin.f32 %v649_v49, 0.9999 }
 0x1c3   : > { %v673_v13 = vsub.f32 1.0, %v651_v59 }
 0x23c   : > { %v601_v51 = vpop.xlane.xlu1 %600 }
 0x23d   : > { %v602_v52 = vrot.slane %v601_v51, 4 }
 0x23f   : > { %v603_v53 = vadd.f32 %v602_v52, %v601_v51  ;;  %v650_v51 = vmax.f32 %v648_v46, 0.0001  ;;  %v628_v52 = vmax.f32 %v626_v43, -9.2103405 }
 0x241   : > { %v604_v54 = vrot.slane %v603_v53, 2  ;;  %v652_v63 = vmin.f32 %v650_v51, 0.9999  ;;  %v1467_v3 = vmin.f32 %v628_v52, -0.000100005 }
 0x243   : > { %v605_v55 = vadd.f32 %v604_v54, %v603_v53  ;;  %v638_v53 = vmax.f32 %v636_v44, -9.2103405  ;;  %v1456_v54 = vmin.f32 %v627_v47, -0.000100005  ;;  %v674_v25 = vsub.f32 1.0, %v652_v63  ;;  %v1197_v47 = vpop.eup %1196 }
 0x244   : > { %v678_v51 = vsub.f32 0.0, %v1467_v3 }
 0x245   : > { %v606_v56 = vrot.slane %v605_v55, 1  ;;  %v640_v4 = vmin.f32 %v638_v53, -0.000100005  ;;  %v677_v42 = vsub.f32 0.0, %v1456_v54  ;;  %v1199_v53 = vpop.eup %1198 }
 0x247   : > { %v607_v57 = vadd.f32 %v606_v56, %v605_v55  ;;  %v639_v55 = vmin.f32 %v637_v48, -0.000100005  ;;  %v787_v56 = vrot.slane %v1452_v50, %v1372_v20  ;;  %v680_v52 = vsub.f32 0.0, %v640_v4 }
 0x249   : > { %1094 = vpush %v607_v57  ;;  %v763_v57 = vrot.slane %v1452_v50, %v1375_v21 }
 0x27a   : > { %s1095_s6 = spop %1094 }
 0x27b   : > { %v910_v7 = vstv %s1095_s6 }
 0x27c   : > { %v911_v8 = vadd.f32 %v910_v7, %v909_v6 }
 0x27e   : > { %912 = vst.msk [vmem:[#allocation4] sm:$0x1] %vm903_vm1, %v911_v8  ;;  %v679_v8 = vsub.f32 0.0, %v639_v55 }
 0x28e   : > { %v583_v58 = vpop.f32.mrb[0].mxu0 }
 0x28f   : > { %v1096_v60 = vtrunc.f32 %v583_v58  ;;  %v707_v62 = vrot.slane %v583_v58, 6  ;;  %v585_v41 = vpop.f32.mrb[1].mxu0 }
 0x290   : > { %v1098_v1 = vtrunc.f32 %v585_v41  ;;  %v708_v2 = vrot.slane %v585_v41, 6 }
 0x291   : > { %v1097_v6 = vcvt.f32.s32 %v1096_v60  ;;  %v711_v7 = vsub.f32 %v583_v58, %v707_v62 }
 0x292   : > { %v1099_v10 = vcvt.f32.s32 %v1098_v1  ;;  %v712_v11 = vsub.f32 %v585_v41, %v708_v2  ;;  %v767_v1 = vrot.slane %v1452_v50, %v1465_v61 }
 0x293   : > { %v658_v17 = vrot.slane %v1097_v6, %v1465_v61  ;;  %v713_v23 = vmul.f32 0.5, %v711_v7  ;;  %v723_v24 = vmax.f32 %v711_v7, 1.0 }
 0x294   : > { %v662_v33 = vrot.slane %v1099_v10, %v1465_v61  ;;  %v714_v34 = vmul.f32 0.5, %v712_v11  ;;  %v724_v35 = vmax.f32 %v712_v11, 1.0 }
 0x295   : > { %v717_v37 = vrot.slane %v713_v23, 2  ;;  %v745_v39 = vmul.f32 %v1189_v0, %v723_v24  ;;  %v752_v40 = vmul.f32 %v1191_v5, %v723_v24  ;;  %vm663_vm9 = vcmp.eq.s32.totalorder %v1360_v15, %v658_v17 }
 0x296   : > { %vm664_vm10 = vcmp.eq.s32.totalorder %v1360_v15, %v662_v33  ;;  %v718_v12 = vrot.slane %v714_v34, 2  ;;  %v746_v43 = vmul.f32 %v1193_v9, %v724_v35  ;;  %v754_v44 = vmul.f32 %v1195_v14, %v724_v35  ;;  %vm1479_vm11 = vmand %vm588_vm5, %vm663_vm9 }
 0x297   : > { %v721_v48 = vadd.f32 %v717_v37, %v583_v58  ;;  %1200 = vlog2.f32 %v745_v39  ;;  %vm1485_vm12 = vmand %vm589_vm7, %vm664_vm10  ;;  %v675_v55 = vsel %vm1479_vm11, %v673_v13, %v651_v59  ;;  %v791_v59 = vrot.slane %v1452_v50, %v790_v36 }
 0x298   : > { %1202 = vlog2.f32 %v752_v40  ;;  %v722_v54 = vadd.f32 %v718_v12, %v585_v41  ;;  %v676_v60 = vsel %vm1485_vm12, %v674_v25, %v652_v63  ;;  %v683_v4 = vmul.f32 %v675_v55, %v675_v55 }
 0x299   : > { %v729_v58 = vsub.f32 %v721_v48, %v725_v28  ;;  %v739_v62 = vsub.f32 %v721_v48, %v735_v30  ;;  %1204 = vlog2.f32 %v746_v43  ;;  %v684_v28 = vmul.f32 %v676_v60, %v676_v60 }
 0x29a   : > { %v730_v2 = vsub.f32 %v722_v54, %v726_v31  ;;  %v740_v41 = vsub.f32 %v722_v54, %v736_v38  ;;  %1206 = vlog2.f32 %v754_v44  ;;  %v1262_v30 = vmov 0.75  }
 0x29b   : > { %v732_v63 = vmul.f32 %v1197_v47, %v729_v58  ;;  %v742_v3 = vmul.f32 %v1189_v0, %v739_v62  ;;  %v671_v6 = vsel %vm1479_vm11, 0.25, %v1262_v30  ;;  %v672_v61 = vsel %vm1485_vm12, 0.25, %v1262_v30 }
 0x29c   : > { %v734_v5 = vmul.f32 %v1199_v53, %v730_v2  ;;  %v744_v18 = vmul.f32 %v1193_v9, %v740_v41  ;;  %v685_v38 = vmul.f32 %v683_v4, %v671_v6  ;;  %v686_v0 = vmul.f32 %v684_v28, %v672_v61 }
 0x29d   : > { %v770_v19 = vsub.f32 %v742_v3, %v763_v57  ;;  %v794_v31 = vsub.f32 %v732_v63, %v787_v56  ;;  %v681_v9 = vsel %vm1479_vm11, %v677_v42, %v679_v8  ;;  %v682_v11 = vsel %vm1485_vm12, %v678_v51, %v680_v52 }
 0x29e   : > { %v771_v7 = vsub.f32 %v744_v18, %v767_v1  ;;  %v795_v10 = vsub.f32 %v734_v5, %v791_v59  ;;  %v822_v14 = vsub.s32 6, %v1360_v15  ;;  %v687_v21 = vmul.f32 %v685_v38, %v681_v9 }
 0x29f   : > { %v772_v13 = vand.u32 2147483647, %v770_v19  ;;  %v688_v56 = vmul.f32 %v686_v0, %v682_v11  ;;  %v851_v57 = vrot.slane %v1452_v50, %v1363_v16  ;;  %v819_v42 = vrot.slane %v1452_v50, %v1378_v22 }
 0x2a0   : > { %v773_v8 = vand.u32 2147483647, %v771_v7  ;;  %v797_v17 = vand.u32 2147483647, %v795_v10  ;;  %v693_v23 = vsel %vm1524_vm13, %v687_v21, 0.0  ;;  %v823_v27 = vrot.slane %v1452_v50, %v822_v14 }
 0x2a1   : > { %v1201_v15 = vpop.eup %1200  ;;  %v694_v24 = vsel %vm670_vm14, %v688_v56, 0.0  ;;  %v776_v25 = vmul.f32 4.5, %v772_v13  ;;  %v796_v34 = vand.u32 2147483647, %v794_v31  ;;  %vm774_vm5 = vcmp.le.f32.partialorder %v772_v13, 0.11111111 }
 0x2a2   : > { %v1203_v16 = vpop.eup %1202  ;;  %v748_v33 = vmul.f32 0.6931472, %v1201_v15  ;;  %v777_v22 = vmul.f32 4.5, %v773_v8  ;;  %v695_v35 = vadd.f32 %v694_v24, %v693_v23  ;;  %v801_v39 = vmul.f32 4.5, %v797_v17 }
 0x2a3   : > { %v1205_v36 = vpop.eup %1204  ;;  %v756_v37 = vmul.f32 0.6931472, %v1203_v16  ;;  %vm775_vm7 = vcmp.le.f32.partialorder %v773_v8, 0.11111111  ;;  %v778_v45 = vmul.f32 %v776_v25, %v772_v13  ;;  %v1083_v48 = vadd.f32 -0.055555556, %v772_v13 }
 0x2a4   : > { %v1207_v40 = vpop.eup %1206  ;;  %v858_v12 = vsub.f32 %v748_v33, %v851_v57  ;;  %v750_v43 = vmul.f32 0.6931472, %v1205_v36  ;;  %696 = vadd.xlane.f32.xlu0 %v695_v35  ;;  %v779_v47 = vmul.f32 %v777_v22, %v773_v8  ;;  %v1084_v52 = vadd.f32 -0.055555556, %v773_v8 }
 0x2a5   : > { %v826_v44 = vsub.f32 %v756_v37, %v819_v42  ;;  %v758_v46 = vmul.f32 0.6931472, %v1207_v40  ;;  %vm798_vm15 = vcmp.le.f32.partialorder %v796_v34, 0.11111111  ;;  %v800_v55 = vmul.f32 4.5, %v796_v34 }
 0x2a6   : > { %v860_v49 = vand.u32 2147483647, %v858_v12  ;;  %v859_v51 = vsub.f32 %v750_v43, %v855_v26  ;;  %v803_v60 = vmul.f32 %v801_v39, %v797_v17  ;;  %v782_v58 = vsel %vm774_vm5, %v778_v45, %v1083_v48 }
 0x2a7   : > { %v828_v53 = vand.u32 2147483647, %v826_v44  ;;  %v827_v54 = vsub.f32 %v758_v46, %v823_v27  ;;  %vm799_vm0 = vcmp.le.f32.partialorder %v797_v17, 0.11111111  ;;  %v1086_v62 = vadd.f32 -0.055555556, %v797_v17 }
 0x2a8   : > { %v861_v50 = vand.u32 2147483647, %v859_v51  ;;  %v802_v2 = vmul.f32 %v800_v55, %v796_v34  ;;  %v1085_v41 = vadd.f32 -0.055555556, %v796_v34  ;;  %v783_v63 = vsel %vm775_vm7, %v779_v47, %v1084_v52  ;;  %v900_v51 = vld [vmem:[#allocation2] sm:$0x1] }
 0x2a9   : > { %v829_v1 = vand.u32 2147483647, %v827_v54  ;;  %v832_v59 = vmul.f32 4.5, %v828_v53  ;;  %v807_v3 = vsel %vm799_vm0, %v803_v60, %v1086_v62  ;;  %vm830_vm2 = vcmp.le.f32.partialorder %v828_v53, 0.11111111 }
 0x2aa   : > { %v1087_v4 = vadd.f32 -0.055555556, %v828_v53  ;;  %v806_v28 = vsel %vm798_vm15, %v802_v2, %v1085_v41  ;;  %v811_v5 = vrot.slane %v807_v3, 7  ;;  %vm862_vm4 = vcmp.le.f32.partialorder %v860_v49, 0.11111111 }
 0x2ab   : > { %v833_v18 = vmul.f32 4.5, %v829_v1  ;;  %v810_v30 = vrot.slane %v806_v28, 7  ;;  %vm831_vm6 = vcmp.le.f32.partialorder %v829_v1, 0.11111111  ;;  %v834_v6 = vmul.f32 %v832_v59, %v828_v53  ;;  %v905_v54 = vld [vmem:[#allocation3] sm:$0x1] }
 0x2ac   : > { %v864_v61 = vmul.f32 4.5, %v860_v49  ;;  %v815_v19 = vadd.f32 %v811_v5, %v783_v63  ;;  %v1088_v38 = vadd.f32 -0.055555556, %v829_v1  ;;  %v865_v0 = vmul.f32 4.5, %v861_v50 }
 0x2ad   : > { %v835_v31 = vmul.f32 %v833_v18, %v829_v1  ;;  %v814_v7 = vadd.f32 %v810_v30, %v782_v58  ;;  %v838_v10 = vsel %vm830_vm2, %v834_v6, %v1087_v4  ;;  %v1089_v11 = vadd.f32 -0.055555556, %v860_v49 }
 0x2ae   : > { %v866_v9 = vmul.f32 %v864_v61, %v860_v49  ;;  %v842_v14 = vrot.slane %v838_v10, 2  ;;  %v867_v20 = vmul.f32 %v865_v0, %v861_v50  ;;  %v1090_v21 = vadd.f32 -0.055555556, %v861_v50 }
 0x2af   : > { %v839_v13 = vsel %vm831_vm6, %v835_v31, %v1088_v38  ;;  %vm863_vm8 = vcmp.le.f32.partialorder %v861_v50, 0.11111111  ;;  %v917_v50 = vld [vmem:[#allocation4] sm:$0x1] (!%p1091_p8) }
 0x2b0   : > { %v843_v56 = vrot.slane %v839_v13, 2  ;;  %v870_v57 = vsel %vm862_vm4, %v866_v9, %v1089_v11  ;;  %v846_v42 = vadd.f32 %v842_v14, %v814_v7  ;;  %v871_v8 = vsel %vm863_vm8, %v867_v20, %v1090_v21 }
 0x2b1   : > { %v874_v17 = vrot.slane %v870_v57, 1  ;;  %v875_v26 = vrot.slane %v871_v8, 1 }
 0x2b2   : > { %v847_v15 = vadd.f32 %v843_v56, %v815_v19 }
 0x2b3   : > { %v878_v23 = vadd.f32 %v874_v17, %v846_v42 }
 0x2b4   : > { %v879_v24 = vadd.f32 %v875_v26, %v847_v15 }
 0x2b5   : > { %v880_v25 = vmul.f32 %v1421_v29, %v878_v23 }
 0x2b6   : > { %v881_v16 = vmul.f32 %v1427_v32, %v879_v24 }
 0x2b7   : > { %v884_v33 = vrot.slane %v880_v25, 1 }
 0x2b8   : > { %v885_v34 = vrot.slane %v881_v16, 1 }
 0x2b9   : > { %v888_v22 = vsel %vm596_vm3, %v884_v33, 0.0 }
 0x2ba   : > { %v889_v35 = vsel %vm596_vm3, %v885_v34, 0.0  ;;  %vm938_vm3 = vcmask (!%p1091_p8), 7168  }
 0x2bb   : > { %v890_v36 = vadd.f32 %v889_v35, %v888_v22 }
 0x2bd   : > { %891 = vadd.xlane.f32.xlu1 %v890_v36 }
 0x331   : > { %v697_v37 = vpop.xlane.xlu0 %696 }
 0x332   : > { %v698_v39 = vrot.slane %v697_v37, 4 }
 0x334   : > { %v699_v27 = vadd.f32 %v698_v39, %v697_v37 }
 0x336   : > { %v700_v40 = vrot.slane %v699_v27, 2 }
 0x338   : > { %v701_v12 = vadd.f32 %v700_v40, %v699_v27 }
 0x33a   : > { %v702_v43 = vrot.slane %v701_v12, 1 }
 0x33c   : > { %v703_v45 = vadd.f32 %v702_v43, %v701_v12 }
 0x33e   : > { %1100 = vpush %v703_v45 }
 0x34a   : > { %v892_v44 = vpop.xlane.xlu1 %891 }
 0x34b   : > { %v893_v29 = vrot.slane %v892_v44, 4 }
 0x34d   : > { %v894_v46 = vadd.f32 %v893_v29, %v892_v44 }
 0x34f   : > { %v895_v32 = vrot.slane %v894_v46, 2 }
 0x351   : > { %v896_v47 = vadd.f32 %v895_v32, %v894_v46 }
 0x353   : > { %v897_v48 = vrot.slane %v896_v47, 1 }
 0x355   : > { %v898_v49 = vadd.f32 %v897_v48, %v896_v47 }
 0x357   : > { %1102 = vpush %v898_v49 }
 0x358   : > { %1104 = vpush (!%p1091_p8), %v917_v50 }
 0x36f   : > { %s1101_s9 = spop %1100 }
 0x370   : > { %v901_v52 = vstv %s1101_s9 }
 0x371   : > { %v902_v53 = vadd.f32 %v901_v52, %v900_v51 }
 0x373   : > { %904 = vst.msk [vmem:[#allocation2] sm:$0x1] %vm903_vm1, %v902_v53 }
 0x37a   : > { %v919_v58 = vld [vmem:[#allocation2] sm:$0x1] (!%p1091_p8) }
 0x37b   : > { %1106 = vpush (!%p1091_p8), %v919_v58 }
 0x386   : > { %916 = sbr.rel (%p1091_p8) target bundleno = 977 (0x3d1), region = 48 }
 0x388   : > { %s1103_s11 = spop %1102 }
 0x389   : > { %v906_v55 = vstv %s1103_s11  ;;  %s1105_s12 = spop (!%p1091_p8), %1104 }
 0x38a   : > { %v907_v60 = vadd.f32 %v906_v55, %v905_v54  ;;  %s921_s14 = smax.f32 (!%p1091_p8), %s1263_s13, %s1105_s12  ;;  %s929_s15 = smul.f32 (!%p1091_p8), 4.0, %s1105_s12 }
 0x38b   : > { %v922_v62 = vstv (!%p1091_p8), %s921_s14  ;;  %p926_p9 = scmp.gt.f32.partialorder (!%p1091_p8), %s1105_s12, 0.0 }
 0x38c   : > { %908 = vst.msk [vmem:[#allocation3] sm:$0x1] %vm903_vm1, %v907_v60  ;;  %1208 = vrcp.f32 (!%p1091_p8), %v922_v62  ;;  %s930_s16 = smax.f32 (!%p1091_p8), %s1263_s13, %s929_s15  ;;  %vm940_vm1 = vcmask (!%p1091_p8), 8192  }
 0x38d   : > { %v931_v1 = vstv %s930_s16 }
 0x38e   : > { %1210 = vrcp.f32 %v931_v1 }
 0x393   : > { %v927_v2 = vld [vmem:[#allocation3] sm:$0x1] }
 0x396   : > { %v1209_v41 = vpop.eup %1208 }
 0x397   : > { %1108 = vpush %v1209_v41 }
 0x398   : > { %1110 = vpush %v927_v2  ;;  %v1211_v59 = vpop.eup %1210 }
 0x399   : > { %1112 = vpush %v1211_v59 }
 0x3ac   : > { %s1107_s18 = spop %1106 }
 0x3c8   : > { %s1109_s17 = spop %1108 }
 0x3c9   : > { %s1111_s25 = spop %1110  ;;  %s925_s26 = smul.f32 %s1109_s17, %s1107_s18 }
 0x3ca   : > { %s1113_s28 = spop %1112 }
 0x3cb   : > { %s934_s7 = smul.f32 %s1113_s28, %s1111_s25  ;;  %v936_v63 = vstv %s925_s26 }
 0x3cd   : > { %s1599_s7 = smov (!%p926_p9, %s934_s7), 0.0 }
 0x3ce   : > { %v937_v3 = vstv %s1599_s7 }
 0x3cf   : > { %v939_v4 = vsel %vm938_vm3, %v936_v63, %v937_v3 }
 0x3d0   : > { %941 = vst.msk [vmem:[%s340_s10] sm:$0x1] %vm940_vm1, %v939_v4 }
 0x3d1 PF: > { %s15_s22 = sadd.s32 1, %s1250_s22   ;;  %s1584_s18 = smov %s1242_s20 }
 0x3d2   : > { %p12_p10 = scmp.ge.s32.totalorder %s15_s22, 6   ;;  %s1585_s19 = smov %s1246_s21 }
 0x3d3   : > { %s1586_s20 = smov %s1589_s23  ;;  %s1587_s21 = smov %s1593_s24 }
 0x3d4   :  { %14 = sbr.rel (!%p12_p10) target bundleno = 3 (0x3), region = 90 }

</bundles_post_ra>
